<compile_context>
chip_gen: v5e
topology: v5e:2x2
jax: 0.10.0
libtpu: 0.0.40
codegen_flags: <defaults>
</compile_context>

<pallas_src>
import math
from functools import partial

import jax
import jax.numpy as jnp
import numpy as np
from jax.experimental import pallas as pl
from jax.experimental.pallas import tpu as pltpu

LATENT_DIM = 20
LATENT_PAD = 128              # latent lanes padded to a full vreg (lane-dense)
HEAD_DIM = 2 * LATENT_PAD     # fused [mu_pad | logvar_pad] head output
IN_DIM = 28 * 28              # 784
H1 = 256
H2 = 64


def _round_up(n, m):
    return ((n + m - 1) // m) * m


# --------------------------------------------------------------------------
# Kernel: one batch tile per grid step, weights resident across steps.
# --------------------------------------------------------------------------
def _vae_kernel(
    x_ref, eps_ref,
    w_e1, b_e1, w_e2, b_e2,
    w_head, b_head,
    w_d1, b_d1, w_d2, b_d2, w_d3, b_d3,
    recon_ref, head_ref,
):
    f32 = jnp.float32
    bf16 = jnp.bfloat16

    x = x_ref[...]                                     # (TB, 784) f32

    # ---- encoder: Linear(784,256)+ReLU, Linear(256,64)+ReLU (bf16 MXU, f32 acc)
    h = jnp.dot(x.astype(bf16), w_e1[...], preferred_element_type=f32) + b_e1[...]
    h = jnp.maximum(h, 0.0)
    h = jnp.dot(h.astype(bf16), w_e2[...], preferred_element_type=f32) + b_e2[...]
    h = jnp.maximum(h, 0.0)

    # ---- fused latent heads: one matmul emits [mu_pad | logvar_pad] (TB, 256)
    head = jnp.dot(h.astype(bf16), w_head[...], preferred_element_type=f32) + b_head[...]
    head_ref[...] = head                               # lane-dense (256-wide) store

    mu = head[:, :LATENT_PAD]                          # pad lanes are exactly 0
    logvar = head[:, LATENT_PAD:]                      # pad lanes are exactly 0

    # ---- reparameterize: z = mu + eps * exp(0.5 * logvar)   (f32 VPU/EUP)
    std = jnp.exp(0.5 * logvar)
    z = mu + eps_ref[...] * std                        # eps pad lanes are 0 -> z pad = 0

    # ---- decoder: Linear(20->64)+ReLU, Linear(64,256)+ReLU, Linear(256,784)+Sigmoid
    d = jnp.dot(z.astype(bf16), w_d1[...], preferred_element_type=f32) + b_d1[...]
    d = jnp.maximum(d, 0.0)
    d = jnp.dot(d.astype(bf16), w_d2[...], preferred_element_type=f32) + b_d2[...]
    d = jnp.maximum(d, 0.0)
    d = jnp.dot(d.astype(bf16), w_d3[...], preferred_element_type=f32) + b_d3[...]
    recon_ref[...] = jax.nn.sigmoid(d)


# --------------------------------------------------------------------------
# Wrapper: batch tiling, padding, specs, cost estimate.
# --------------------------------------------------------------------------
@partial(jax.jit, static_argnames=("batch_tile",))
def vae_forward(x, eps, packed_params, *, batch_tile=256):
    """Fused VAE forward. x: (B, 784) f32, eps: (B, 20) f32.
    Returns (recon, mu, logvar) matching the PyTorch module."""
    B = x.shape[0]
    # Batch tile: 256 on v6e/v7x-class parts (set batch_tile=128 on v5e);
    # shrinks to the (8-aligned) batch for tiny demo batches.
    TB = min(batch_tile, _round_up(max(B, 1), 8))
    Bp = _round_up(B, TB)

    x_p = x.astype(jnp.float32)
    if Bp != B:
        x_p = jnp.zeros((Bp, IN_DIM), jnp.float32).at[:B].set(x_p)
    # eps: pad latent lanes 20 -> 128 with zeros (lane-dense load, exact math).
    eps_p = jnp.zeros((Bp, LATENT_PAD), jnp.float32).at[:B, :LATENT_DIM].set(
        eps.astype(jnp.float32))

    operands = [x_p, eps_p] + list(packed_params)

    def io_spec(feat):
        return pl.BlockSpec((TB, feat), lambda i: (i, 0))

    def const_spec(shape):
        nd = len(shape)
        return pl.BlockSpec(shape, lambda i, _n=nd: (0,) * _n)

    in_specs = [io_spec(IN_DIM), io_spec(LATENT_PAD)] + [
        const_spec(p.shape) for p in packed_params
    ]
    # NOTE: weights never change across grid steps; pipeline_mode=pl.Buffered(1)
    # on their specs would save ~1 MiB of double-buffer VMEM (left at default
    # for maximum portability — footprint already fits comfortably).

    out_shapes = (
        jax.ShapeDtypeStruct((Bp, IN_DIM), jnp.float32),    # reconstruction
        jax.ShapeDtypeStruct((Bp, HEAD_DIM), jnp.float32),  # packed [mu|logvar]
    )
    out_specs = (io_spec(IN_DIM), io_spec(HEAD_DIM))

    flops = 2 * Bp * (IN_DIM * H1 + H1 * H2 + H2 * HEAD_DIM
                      + LATENT_PAD * H2 + H2 * H1 + H1 * IN_DIM)
    transcendentals = Bp * (LATENT_PAD + IN_DIM)            # exp(std) + sigmoid
    bytes_accessed = (
        sum(int(np.prod(op.shape)) * op.dtype.itemsize for op in operands)
        + sum(int(np.prod(s.shape)) * 4 for s in out_shapes)
    )

    recon_p, head_p = pl.pallas_call(
        _vae_kernel,
        out_shape=out_shapes,
        grid=(Bp // TB,),
        in_specs=in_specs,
        out_specs=out_specs,
        compiler_params=pltpu.CompilerParams(
            dimension_semantics=("parallel",),   # v7x: 2 TCs split the batch axis
            vmem_limit_bytes=32 << 20,           # sized to real footprint (~6 MiB used)
        ),
        cost_estimate=pl.CostEstimate(
            flops=flops,
            transcendentals=transcendentals,
            bytes_accessed=bytes_accessed,
        ),
    )(*operands)

    recon = recon_p[:B]
    mu = head_p[:B, :LATENT_DIM]
    logvar = head_p[:B, LATENT_PAD:LATENT_PAD + LATENT_DIM]
    return recon, mu, logvar


# --------------------------------------------------------------------------
# Parameter init (torch nn.Linear default: U(-1/sqrt(fan_in), 1/sqrt(fan_in)))
# and packing into the kernel layout (bf16 weights, fused/padded latent head).
# --------------------------------------------------------------------------
def init_params(key):
    """Returns 7 (W, b) pairs, W stored (in_features, out_features), f32."""
    layer_shapes = [
        (IN_DIM, H1),            # encoder Linear 1
        (H1, H2),                # encoder Linear 2
        (H2, LATENT_DIM),        # fc_mu
        (H2, LATENT_DIM),        # fc_logvar
        (LATENT_DIM, H2),        # decoder Linear 1
        (H2, H1),                # decoder Linear 2
        (H1, IN_DIM),            # decoder Linear 3
    ]
    keys = jax.random.split(key, 2 * len(layer_shapes))
    params = []
    for idx, (fan_in, fan_out) in enumerate(layer_shapes):
        bound = 1.0 / math.sqrt(fan_in)
        w = jax.random.uniform(keys[2 * idx], (fan_in, fan_out), jnp.float32, -bound, bound)
        b = jax.random.uniform(keys[2 * idx + 1], (fan_out,), jnp.float32, -bound, bound)
        params.append((w, b))
    return params


def pack_params(params):
    """Fuse mu|logvar heads, zero-pad latent dims to 128 lanes, cast weights bf16."""
    ((w_e1, b_e1), (w_e2, b_e2), (w_mu, b_mu), (w_lv, b_lv),
     (w_d1, b_d1), (w_d2, b_d2), (w_d3, b_d3)) = params
    f32, bf16 = jnp.float32, jnp.bfloat16

    w_head = jnp.zeros((H2, HEAD_DIM), f32)
    w_head = w_head.at[:, :LATENT_DIM].set(w_mu)
    w_head = w_head.at[:, LATENT_PAD:LATENT_PAD + LATENT_DIM].set(w_lv)
    b_head = jnp.zeros((1, HEAD_DIM), f32)
    b_head = b_head.at[0, :LATENT_DIM].set(b_mu)
    b_head = b_head.at[0, LATENT_PAD:LATENT_PAD + LATENT_DIM].set(b_lv)

    w_d1p = jnp.zeros((LATENT_PAD, H2), f32).at[:LATENT_DIM].set(w_d1)

    def W(a):  # MXU input dtype
        return a.astype(bf16)

    def Bv(a):  # f32 row-vector biases (element-wise adds stay f32)
        return a.reshape(1, -1).astype(f32)

    return [
        W(w_e1), Bv(b_e1), W(w_e2), Bv(b_e2),
        W(w_head), b_head,
        W(w_d1p), Bv(b_d1), W(w_d2), Bv(b_d2), W(w_d3), Bv(b_d3),
    ]


def vae_reference(x, eps, params):
    """Pure-JAX f32 reference mirroring the PyTorch module."""
    ((w_e1, b_e1), (w_e2, b_e2), (w_mu, b_mu), (w_lv, b_lv),
     (w_d1, b_d1), (w_d2, b_d2), (w_d3, b_d3)) = params
    h = jax.nn.relu(x @ w_e1 + b_e1)
    h = jax.nn.relu(h @ w_e2 + b_e2)
    mu = h @ w_mu + b_mu
    logvar = h @ w_lv + b_lv
    z = mu + eps * jnp.exp(0.5 * logvar)
    d = jax.nn.relu(z @ w_d1 + b_d1)
    d = jax.nn.relu(d @ w_d2 + b_d2)
    recon = jax.nn.sigmoid(d @ w_d3 + b_d3)
    return recon, mu, logvar


if __name__ == "__main__":
    key = jax.random.PRNGKey(0)
    k_x, k_eps, k_p, k_x2, k_eps2 = jax.random.split(key, 5)

    params = init_params(k_p)
    packed = pack_params(params)

    # Small demo batch (reparameterization noise supplied explicitly).
    B = 8
    x = jax.random.uniform(k_x, (B, IN_DIM), jnp.float32)
    eps = jax.random.normal(k_eps, (B, LATENT_DIM), jnp.float32)

    recon, mu, logvar = vae_forward(x, eps, packed)
    jax.block_until_ready((recon, mu, logvar))

    r_recon, r_mu, r_logvar = vae_reference(x, eps, params)
    assert recon.shape == (B, IN_DIM)
    assert mu.shape == (B, LATENT_DIM) and logvar.shape == (B, LATENT_DIM)
    assert bool(jnp.all(jnp.isfinite(recon)))
    assert bool(jnp.all((recon >= 0.0) & (recon <= 1.0)))
    assert bool(jnp.allclose(mu, r_mu, atol=5e-2, rtol=5e-2))
    assert bool(jnp.allclose(logvar, r_logvar, atol=5e-2, rtol=5e-2))
    assert bool(jnp.allclose(recon, r_recon, atol=5e-2, rtol=5e-2))

    # Larger, non-multiple batch exercises the batch-tiled grid + padding path.
    B2 = 300
    x2 = jax.random.uniform(k_x2, (B2, IN_DIM), jnp.float32)
    eps2 = jax.random.normal(k_eps2, (B2, LATENT_DIM), jnp.float32)
    recon2, mu2, logvar2 = vae_forward(x2, eps2, packed)
    jax.block_until_ready((recon2, mu2, logvar2))
    r_recon2, r_mu2, r_logvar2 = vae_reference(x2, eps2, params)
    assert recon2.shape == (B2, IN_DIM)
    assert bool(jnp.allclose(recon2, r_recon2, atol=5e-2, rtol=5e-2))
    assert bool(jnp.allclose(mu2, r_mu2, atol=5e-2, rtol=5e-2))

    print("KERNEL_OK")
</pallas_src>

<mosaic_0001>
module attributes {stable_mosaic.version = 11 : i64} {
  func.func @_vae_kernel(%arg0: i32, %arg1: memref<8x784xf32, #tpu.memory_space<vmem>>, %arg2: memref<8x128xf32, #tpu.memory_space<vmem>>, %arg3: memref<784x256xbf16, #tpu.memory_space<vmem>>, %arg4: memref<1x256xf32, #tpu.memory_space<vmem>>, %arg5: memref<256x64xbf16, #tpu.memory_space<vmem>>, %arg6: memref<1x64xf32, #tpu.memory_space<vmem>>, %arg7: memref<64x256xbf16, #tpu.memory_space<vmem>>, %arg8: memref<1x256xf32, #tpu.memory_space<vmem>>, %arg9: memref<128x64xbf16, #tpu.memory_space<vmem>>, %arg10: memref<1x64xf32, #tpu.memory_space<vmem>>, %arg11: memref<64x256xbf16, #tpu.memory_space<vmem>>, %arg12: memref<1x256xf32, #tpu.memory_space<vmem>>, %arg13: memref<256x784xbf16, #tpu.memory_space<vmem>>, %arg14: memref<1x784xf32, #tpu.memory_space<vmem>>, %arg15: memref<8x784xf32, #tpu.memory_space<vmem>>, %arg16: memref<8x256xf32, #tpu.memory_space<vmem>>) attributes {dimension_semantics = [#tpu.dimension_semantics<parallel>], iteration_bounds = array<i64: 1>, scalar_prefetch = 0 : i64, scratch_operands = 0 : i64, tpu.core_type = #tpu.core_type<tc>, window_params = [{transform_indices = @transform_0, window_bounds = array<i64: 8, 784>}, {transform_indices = @transform_1, window_bounds = array<i64: 8, 128>}, {pipeline_mode = #tpu.pipeline_mode<synchronous>, transform_indices = @transform_2, window_bounds = array<i64: 784, 256>}, {pipeline_mode = #tpu.pipeline_mode<synchronous>, transform_indices = @transform_3, window_bounds = array<i64: 1, 256>}, {pipeline_mode = #tpu.pipeline_mode<synchronous>, transform_indices = @transform_4, window_bounds = array<i64: 256, 64>}, {pipeline_mode = #tpu.pipeline_mode<synchronous>, transform_indices = @transform_5, window_bounds = array<i64: 1, 64>}, {pipeline_mode = #tpu.pipeline_mode<synchronous>, transform_indices = @transform_6, window_bounds = array<i64: 64, 256>}, {pipeline_mode = #tpu.pipeline_mode<synchronous>, transform_indices = @transform_7, window_bounds = array<i64: 1, 256>}, {pipeline_mode = #tpu.pipeline_mode<synchronous>, transform_indices = @transform_8, window_bounds = array<i64: 128, 64>}, {pipeline_mode = #tpu.pipeline_mode<synchronous>, transform_indices = @transform_9, window_bounds = array<i64: 1, 64>}, {pipeline_mode = #tpu.pipeline_mode<synchronous>, transform_indices = @transform_10, window_bounds = array<i64: 64, 256>}, {pipeline_mode = #tpu.pipeline_mode<synchronous>, transform_indices = @transform_11, window_bounds = array<i64: 1, 256>}, {pipeline_mode = #tpu.pipeline_mode<synchronous>, transform_indices = @transform_12, window_bounds = array<i64: 256, 784>}, {pipeline_mode = #tpu.pipeline_mode<synchronous>, transform_indices = @transform_13, window_bounds = array<i64: 1, 784>}, {transform_indices = @transform_14, window_bounds = array<i64: 8, 784>}, {transform_indices = @transform_15, window_bounds = array<i64: 8, 256>}]} {
    %c0 = arith.constant 0 : index
    %c0_0 = arith.constant 0 : index
    %0 = vector.load %arg1[%c0, %c0_0] : memref<8x784xf32, #tpu.memory_space<vmem>>, vector<8x784xf32>
    %1 = arith.truncf %0 : vector<8x784xf32> to vector<8x784xbf16>
    %c0_1 = arith.constant 0 : index
    %c0_2 = arith.constant 0 : index
    %2 = vector.load %arg3[%c0_1, %c0_2] : memref<784x256xbf16, #tpu.memory_space<vmem>>, vector<784x256xbf16>
    %cst = arith.constant dense<0.000000e+00> : vector<8x256xf32>
    %3 = tpu.matmul %1, %2, %cst {dimension_numbers = #tpu.dot_dimension_numbers<[1], [0], [0], [1], [0, 0, 1, 1], [], []>} : vector<8x784xbf16>, vector<784x256xbf16>, vector<8x256xf32> -> vector<8x256xf32>
    %c0_3 = arith.constant 0 : index
    %c0_4 = arith.constant 0 : index
    %4 = vector.load %arg4[%c0_3, %c0_4] : memref<1x256xf32, #tpu.memory_space<vmem>>, vector<1x256xf32>
    %5 = vector.broadcast %4 : vector<1x256xf32> to vector<8x256xf32>
    %6 = arith.addf %3, %5 : vector<8x256xf32>
    %cst_5 = arith.constant 0.000000e+00 : f32
    %7 = vector.broadcast %cst_5 : f32 to vector<8x256xf32>
    %8 = arith.maximumf %6, %7 : vector<8x256xf32>
    %9 = arith.truncf %8 : vector<8x256xf32> to vector<8x256xbf16>
    %c0_6 = arith.constant 0 : index
    %c0_7 = arith.constant 0 : index
    %10 = vector.load %arg5[%c0_6, %c0_7] : memref<256x64xbf16, #tpu.memory_space<vmem>>, vector<256x64xbf16>
    %cst_8 = arith.constant dense<0.000000e+00> : vector<8x64xf32>
    %11 = tpu.matmul %9, %10, %cst_8 {dimension_numbers = #tpu.dot_dimension_numbers<[1], [0], [0], [1], [0, 0, 1, 1], [], []>} : vector<8x256xbf16>, vector<256x64xbf16>, vector<8x64xf32> -> vector<8x64xf32>
    %c0_9 = arith.constant 0 : index
    %c0_10 = arith.constant 0 : index
    %12 = vector.load %arg6[%c0_9, %c0_10] : memref<1x64xf32, #tpu.memory_space<vmem>>, vector<1x64xf32>
    %13 = vector.broadcast %12 : vector<1x64xf32> to vector<8x64xf32>
    %14 = arith.addf %11, %13 : vector<8x64xf32>
    %cst_11 = arith.constant 0.000000e+00 : f32
    %15 = vector.broadcast %cst_11 : f32 to vector<8x64xf32>
    %16 = arith.maximumf %14, %15 : vector<8x64xf32>
    %17 = arith.truncf %16 : vector<8x64xf32> to vector<8x64xbf16>
    %c0_12 = arith.constant 0 : index
    %c0_13 = arith.constant 0 : index
    %18 = vector.load %arg7[%c0_12, %c0_13] : memref<64x256xbf16, #tpu.memory_space<vmem>>, vector<64x256xbf16>
    %cst_14 = arith.constant dense<0.000000e+00> : vector<8x256xf32>
    %19 = tpu.matmul %17, %18, %cst_14 {dimension_numbers = #tpu.dot_dimension_numbers<[1], [0], [0], [1], [0, 0, 1, 1], [], []>} : vector<8x64xbf16>, vector<64x256xbf16>, vector<8x256xf32> -> vector<8x256xf32>
    %c0_15 = arith.constant 0 : index
    %c0_16 = arith.constant 0 : index
    %20 = vector.load %arg8[%c0_15, %c0_16] : memref<1x256xf32, #tpu.memory_space<vmem>>, vector<1x256xf32>
    %21 = vector.broadcast %20 : vector<1x256xf32> to vector<8x256xf32>
    %22 = arith.addf %19, %21 : vector<8x256xf32>
    %c0_17 = arith.constant 0 : index
    %c0_18 = arith.constant 0 : index
    %23 = vector.load %arg16[%c0_17, %c0_18] : memref<8x256xf32, #tpu.memory_space<vmem>>, vector<8x256xf32>
    tpu.vector_store %arg16[%c0_17, %c0_18], %22 {strides = array<i32>} : memref<8x256xf32, #tpu.memory_space<vmem>>, vector<8x256xf32>,
    %24 = vector.extract_strided_slice %22 {offsets = [0, 0], sizes = [8, 128], strides = [1, 1]} : vector<8x256xf32> to vector<8x128xf32>
    %25 = vector.extract_strided_slice %22 {offsets = [0, 128], sizes = [8, 128], strides = [1, 1]} : vector<8x256xf32> to vector<8x128xf32>
    %cst_19 = arith.constant 5.000000e-01 : f32
    %26 = vector.broadcast %cst_19 : f32 to vector<8x128xf32>
    %27 = arith.mulf %26, %25 : vector<8x128xf32>
    %28 = math.exp %27 : vector<8x128xf32>
    %c0_20 = arith.constant 0 : index
    %c0_21 = arith.constant 0 : index
    %29 = vector.load %arg2[%c0_20, %c0_21] : memref<8x128xf32, #tpu.memory_space<vmem>>, vector<8x128xf32>
    %30 = arith.mulf %29, %28 : vector<8x128xf32>
    %31 = arith.addf %24, %30 : vector<8x128xf32>
    %32 = arith.truncf %31 : vector<8x128xf32> to vector<8x128xbf16>
    %c0_22 = arith.constant 0 : index
    %c0_23 = arith.constant 0 : index
    %33 = vector.load %arg9[%c0_22, %c0_23] : memref<128x64xbf16, #tpu.memory_space<vmem>>, vector<128x64xbf16>
    %cst_24 = arith.constant dense<0.000000e+00> : vector<8x64xf32>
    %34 = tpu.matmul %32, %33, %cst_24 {dimension_numbers = #tpu.dot_dimension_numbers<[1], [0], [0], [1], [0, 0, 1, 1], [], []>} : vector<8x128xbf16>, vector<128x64xbf16>, vector<8x64xf32> -> vector<8x64xf32>
    %c0_25 = arith.constant 0 : index
    %c0_26 = arith.constant 0 : index
    %35 = vector.load %arg10[%c0_25, %c0_26] : memref<1x64xf32, #tpu.memory_space<vmem>>, vector<1x64xf32>
    %36 = vector.broadcast %35 : vector<1x64xf32> to vector<8x64xf32>
    %37 = arith.addf %34, %36 : vector<8x64xf32>
    %cst_27 = arith.constant 0.000000e+00 : f32
    %38 = vector.broadcast %cst_27 : f32 to vector<8x64xf32>
    %39 = arith.maximumf %37, %38 : vector<8x64xf32>
    %40 = arith.truncf %39 : vector<8x64xf32> to vector<8x64xbf16>
    %c0_28 = arith.constant 0 : index
    %c0_29 = arith.constant 0 : index
    %41 = vector.load %arg11[%c0_28, %c0_29] : memref<64x256xbf16, #tpu.memory_space<vmem>>, vector<64x256xbf16>
    %cst_30 = arith.constant dense<0.000000e+00> : vector<8x256xf32>
    %42 = tpu.matmul %40, %41, %cst_30 {dimension_numbers = #tpu.dot_dimension_numbers<[1], [0], [0], [1], [0, 0, 1, 1], [], []>} : vector<8x64xbf16>, vector<64x256xbf16>, vector<8x256xf32> -> vector<8x256xf32>
    %c0_31 = arith.constant 0 : index
    %c0_32 = arith.constant 0 : index
    %43 = vector.load %arg12[%c0_31, %c0_32] : memref<1x256xf32, #tpu.memory_space<vmem>>, vector<1x256xf32>
    %44 = vector.broadcast %43 : vector<1x256xf32> to vector<8x256xf32>
    %45 = arith.addf %42, %44 : vector<8x256xf32>
    %cst_33 = arith.constant 0.000000e+00 : f32
    %46 = vector.broadcast %cst_33 : f32 to vector<8x256xf32>
    %47 = arith.maximumf %45, %46 : vector<8x256xf32>
    %48 = arith.truncf %47 : vector<8x256xf32> to vector<8x256xbf16>
    %c0_34 = arith.constant 0 : index
    %c0_35 = arith.constant 0 : index
    %49 = vector.load %arg13[%c0_34, %c0_35] : memref<256x784xbf16, #tpu.memory_space<vmem>>, vector<256x784xbf16>
    %cst_36 = arith.constant dense<0.000000e+00> : vector<8x784xf32>
    %50 = tpu.matmul %48, %49, %cst_36 {dimension_numbers = #tpu.dot_dimension_numbers<[1], [0], [0], [1], [0, 0, 1, 1], [], []>} : vector<8x256xbf16>, vector<256x784xbf16>, vector<8x784xf32> -> vector<8x784xf32>
    %c0_37 = arith.constant 0 : index
    %c0_38 = arith.constant 0 : index
    %51 = vector.load %arg14[%c0_37, %c0_38] : memref<1x784xf32, #tpu.memory_space<vmem>>, vector<1x784xf32>
    %52 = vector.broadcast %51 : vector<1x784xf32> to vector<8x784xf32>
    %53 = arith.addf %50, %52 : vector<8x784xf32>
    %54 = arith.negf %53 : vector<8x784xf32>
    %55 = math.exp %54 : vector<8x784xf32>
    %cst_39 = arith.constant 1.000000e+00 : f32
    %56 = vector.broadcast %cst_39 : f32 to vector<8x784xf32>
    %57 = arith.addf %56, %55 : vector<8x784xf32>
    %58 = arith.divf %56, %57 : vector<8x784xf32>
    %c0_40 = arith.constant 0 : index
    %c0_41 = arith.constant 0 : index
    %59 = vector.load %arg15[%c0_40, %c0_41] : memref<8x784xf32, #tpu.memory_space<vmem>>, vector<8x784xf32>
    tpu.vector_store %arg15[%c0_40, %c0_41], %58 {strides = array<i32>} : memref<8x784xf32, #tpu.memory_space<vmem>>, vector<8x784xf32>,
    return
  }
  func.func @transform_0(%arg0: i32) -> (i32, i32) {
    %c0_i32 = arith.constant 0 : i32
    %c0_i32_0 = arith.constant 0 : i32
    return %arg0, %c0_i32 : i32, i32
  }
  func.func @transform_1(%arg0: i32) -> (i32, i32) {
    %c0_i32 = arith.constant 0 : i32
    %c0_i32_0 = arith.constant 0 : i32
    return %arg0, %c0_i32 : i32, i32
  }
  func.func @transform_2(%arg0: i32) -> (i32, i32) {
    %c0_i32 = arith.constant 0 : i32
    %c0_i32_0 = arith.constant 0 : i32
    %c0_i32_1 = arith.constant 0 : i32
    return %c0_i32, %c0_i32_0 : i32, i32
  }
  func.func @transform_3(%arg0: i32) -> (i32, i32) {
    %c0_i32 = arith.constant 0 : i32
    %c0_i32_0 = arith.constant 0 : i32
    %c0_i32_1 = arith.constant 0 : i32
    return %c0_i32, %c0_i32_0 : i32, i32
  }
  func.func @transform_4(%arg0: i32) -> (i32, i32) {
    %c0_i32 = arith.constant 0 : i32
    %c0_i32_0 = arith.constant 0 : i32
    %c0_i32_1 = arith.constant 0 : i32
    return %c0_i32, %c0_i32_0 : i32, i32
  }
  func.func @transform_5(%arg0: i32) -> (i32, i32) {
    %c0_i32 = arith.constant 0 : i32
    %c0_i32_0 = arith.constant 0 : i32
    %c0_i32_1 = arith.constant 0 : i32
    return %c0_i32, %c0_i32_0 : i32, i32
  }
  func.func @transform_6(%arg0: i32) -> (i32, i32) {
    %c0_i32 = arith.constant 0 : i32
    %c0_i32_0 = arith.constant 0 : i32
    %c0_i32_1 = arith.constant 0 : i32
    return %c0_i32, %c0_i32_0 : i32, i32
  }
  func.func @transform_7(%arg0: i32) -> (i32, i32) {
    %c0_i32 = arith.constant 0 : i32
    %c0_i32_0 = arith.constant 0 : i32
    %c0_i32_1 = arith.constant 0 : i32
    return %c0_i32, %c0_i32_0 : i32, i32
  }
  func.func @transform_8(%arg0: i32) -> (i32, i32) {
    %c0_i32 = arith.constant 0 : i32
    %c0_i32_0 = arith.constant 0 : i32
    %c0_i32_1 = arith.constant 0 : i32
    return %c0_i32, %c0_i32_0 : i32, i32
  }
  func.func @transform_9(%arg0: i32) -> (i32, i32) {
    %c0_i32 = arith.constant 0 : i32
    %c0_i32_0 = arith.constant 0 : i32
    %c0_i32_1 = arith.constant 0 : i32
    return %c0_i32, %c0_i32_0 : i32, i32
  }
  func.func @transform_10(%arg0: i32) -> (i32, i32) {
    %c0_i32 = arith.constant 0 : i32
    %c0_i32_0 = arith.constant 0 : i32
    %c0_i32_1 = arith.constant 0 : i32
    return %c0_i32, %c0_i32_0 : i32, i32
  }
  func.func @transform_11(%arg0: i32) -> (i32, i32) {
    %c0_i32 = arith.constant 0 : i32
    %c0_i32_0 = arith.constant 0 : i32
    %c0_i32_1 = arith.constant 0 : i32
    return %c0_i32, %c0_i32_0 : i32, i32
  }
  func.func @transform_12(%arg0: i32) -> (i32, i32) {
    %c0_i32 = arith.constant 0 : i32
    %c0_i32_0 = arith.constant 0 : i32
    %c0_i32_1 = arith.constant 0 : i32
    return %c0_i32, %c0_i32_0 : i32, i32
  }
  func.func @transform_13(%arg0: i32) -> (i32, i32) {
    %c0_i32 = arith.constant 0 : i32
    %c0_i32_0 = arith.constant 0 : i32
    %c0_i32_1 = arith.constant 0 : i32
    return %c0_i32, %c0_i32_0 : i32, i32
  }
  func.func @transform_14(%arg0: i32) -> (i32, i32) {
    %c0_i32 = arith.constant 0 : i32
    %c0_i32_0 = arith.constant 0 : i32
    return %arg0, %c0_i32 : i32, i32
  }
  func.func @transform_15(%arg0: i32) -> (i32, i32) {
    %c0_i32 = arith.constant 0 : i32
    %c0_i32_0 = arith.constant 0 : i32
    return %arg0, %c0_i32 : i32, i32
  }
}

</mosaic_0001>

<bundles_post_ra>
// kernel: vae_forward.1
= control target key start
LH: loop header
LB: loop body
LE: loop exit
PB: predicated region body
PF: predicated region fallthrough
CT: control target
= control target key end

     0   :  { %vm659_vm0 = vcmask 130048   ;;  %s5283_s0 = inlined_call_operand.vmem [shape: f32[8,784], index: 0, kind: input, shape index: {}]   ;;  %s5284_s1 = inlined_call_operand.vmem [shape: f32[8,128], index: 1, kind: input, shape index: {}]   ;;  %s5285_s2 = inlined_call_operand.vmem [shape: bf16[784,256], index: 2, kind: input, shape index: {}]   ;;  %s5286_s3 = inlined_call_operand.vmem [shape: f32[1,256], index: 3, kind: input, shape index: {}]   ;;  %s5287_s4 = inlined_call_operand.vmem [shape: bf16[256,64], index: 4, kind: input, shape index: {}]   ;;  %s5288_s5 = inlined_call_operand.vmem [shape: f32[1,64], index: 5, kind: input, shape index: {}]   ;;  %s5289_s6 = inlined_call_operand.vmem [shape: bf16[64,256], index: 6, kind: input, shape index: {}]   ;;  %s5290_s7 = inlined_call_operand.vmem [shape: f32[1,256], index: 7, kind: input, shape index: {}]   ;;  %s5291_s8 = inlined_call_operand.vmem [shape: bf16[128,64], index: 8, kind: input, shape index: {}]   ;;  %s5292_s9 = inlined_call_operand.vmem [shape: f32[1,64], index: 9, kind: input, shape index: {}]   ;;  %s5293_s10 = inlined_call_operand.vmem [shape: bf16[64,256], index: 10, kind: input, shape index: {}]   ;;  %s5294_s11 = inlined_call_operand.vmem [shape: f32[1,256], index: 11, kind: input, shape index: {}]   ;;  %s5295_s12 = inlined_call_operand.vmem [shape: bf16[256,784], index: 12, kind: input, shape index: {}]   ;;  %s5296_s13 = inlined_call_operand.vmem [shape: f32[1,784], index: 13, kind: input, shape index: {}]   ;;  %s5297_s14 = inlined_call_operand.hbm [shape: f32[8,784], index: 14, kind: output, shape index: {0}]   ;;  %s5298_s15 = inlined_call_operand.vmem [shape: f32[8,256], index: 15, kind: output, shape index: {1}]  }
   0x1   :  { %v2392_v0 = vld [vmem:[%s5285_s2 + $0x70] sm:$0xf]  ;;  %v3362_v1 = vld [vmem:[%s5285_s2 + $0x74] sm:$0xf0]  ;;  %v2384_v11 = vld [vmem:[%s5285_s2 + $0x60] sm:$0xf] }
   0x2   :  { %v2520_v2 = vld [vmem:[%s5285_s2 + $0x170] sm:$0xf]  ;;  %v2393_v3 = vor.u32 %v3362_v1, %v2392_v0  ;;  %v3394_v4 = vld [vmem:[%s5285_s2 + $0x174] sm:$0xf0]  ;;  %v3360_v13 = vld [vmem:[%s5285_s2 + $0x64] sm:$0xf0] }
   0x3   :  { %v2584_v5 = vld [vmem:[%s5285_s2 + $0x1f0] sm:$0xf]  ;;  %v3410_v6 = vld [vmem:[%s5285_s2 + $0x1f4] sm:$0xf0]  ;;  %v2521_v7 = vor.u32 %v3394_v4, %v2520_v2  ;;  %v2512_v14 = vld [vmem:[%s5285_s2 + $0x160] sm:$0xf]  ;;  %v2385_v16 = vor.u32 %v3360_v13, %v2384_v11 }
   0x4   :  { %v2585_v8 = vor.u32 %v3410_v6, %v2584_v5  ;;  %v2456_v9 = vld [vmem:[%s5285_s2 + $0xf0] sm:$0xf]  ;;  %v3378_v10 = vld [vmem:[%s5285_s2 + $0xf4] sm:$0xf0]  ;;  %663 = vmatpush.bf16.msra.mxu0 %v2393_v3  ;;  %v3392_v15 = vld [vmem:[%s5285_s2 + $0x164] sm:$0xf0] }
   0x5   :  { %v2457_v12 = vor.u32 %v3378_v10, %v2456_v9  ;;  %689 = vmatpush.bf16.msra.mxu2 %v2521_v7  ;;  %v2513_v17 = vor.u32 %v3392_v15, %v2512_v14  ;;  %v2576_v18 = vld [vmem:[%s5285_s2 + $0x1e0] sm:$0xf]  ;;  %v3408_v19 = vld [vmem:[%s5285_s2 + $0x1e4] sm:$0xf0]  ;;  %v2376_v23 = vld [vmem:[%s5285_s2 + $0x50] sm:$0xf] }
   0x6   :  { %702 = vmatpush.bf16.msra.mxu3 %v2585_v8  ;;  %v2448_v20 = vld [vmem:[%s5285_s2 + $0xe0] sm:$0xf]  ;;  %v2577_v21 = vor.u32 %v3408_v19, %v2576_v18  ;;  %v3376_v22 = vld [vmem:[%s5285_s2 + $0xe4] sm:$0xf0]  ;;  %v3358_v24 = vld [vmem:[%s5285_s2 + $0x54] sm:$0xf0] }
   0x7   :  { %676 = vmatpush.bf16.msra.mxu1 %v2457_v12  ;;  %v2449_v25 = vor.u32 %v3376_v22, %v2448_v20  ;;  %v2504_v26 = vld [vmem:[%s5285_s2 + $0x150] sm:$0xf]  ;;  %v3390_v27 = vld [vmem:[%s5285_s2 + $0x154] sm:$0xf0]  ;;  %v2377_v29 = vor.u32 %v3358_v24, %v2376_v23  ;;  %v2368_v35 = vld [vmem:[%s5285_s2 + $0x40] sm:$0xf] }
   0x8   :  { %v2568_v28 = vld [vmem:[%s5285_s2 + $0x1d0] sm:$0xf]  ;;  %664 = vmatpush.bf16.msra.mxu0 %v2385_v16  ;;  %v3406_v30 = vld [vmem:[%s5285_s2 + $0x1d4] sm:$0xf0]  ;;  %v2505_v33 = vor.u32 %v3390_v27, %v2504_v26  ;;  %v3356_v36 = vld [vmem:[%s5285_s2 + $0x44] sm:$0xf0] }
   0x9   :  { %v2440_v31 = vld [vmem:[%s5285_s2 + $0xd0] sm:$0xf]  ;;  %v3374_v32 = vld [vmem:[%s5285_s2 + $0xd4] sm:$0xf0]  ;;  %690 = vmatpush.bf16.msra.mxu2 %v2513_v17  ;;  %v2569_v34 = vor.u32 %v3406_v30, %v2568_v28  ;;  %v2496_v37 = vld [vmem:[%s5285_s2 + $0x140] sm:$0xf]  ;;  %v2369_v44 = vor.u32 %v3356_v36, %v2368_v35 }
   0xa   :  { %703 = vmatpush.bf16.msra.mxu3 %v2577_v21  ;;  %v2441_v38 = vor.u32 %v3374_v32, %v2440_v31  ;;  %v3388_v39 = vld [vmem:[%s5285_s2 + $0x144] sm:$0xf0]  ;;  %v2560_v40 = vld [vmem:[%s5285_s2 + $0x1c0] sm:$0xf]  ;;  %v2360_v47 = vld [vmem:[%s5285_s2 + $0x30] sm:$0xf] }
   0xb   :  { %677 = vmatpush.bf16.msra.mxu1 %v2449_v25  ;;  %v3404_v41 = vld [vmem:[%s5285_s2 + $0x1c4] sm:$0xf0]  ;;  %v2432_v42 = vld [vmem:[%s5285_s2 + $0xc0] sm:$0xf]  ;;  %v2497_v45 = vor.u32 %v3388_v39, %v2496_v37  ;;  %v3354_v48 = vld [vmem:[%s5285_s2 + $0x34] sm:$0xf0] }
   0xc   :  { %v3372_v43 = vld [vmem:[%s5285_s2 + $0xc4] sm:$0xf0]  ;;  %665 = vmatpush.bf16.msra.mxu0 %v2377_v29  ;;  %v2561_v46 = vor.u32 %v3404_v41, %v2560_v40  ;;  %v2488_v49 = vld [vmem:[%s5285_s2 + $0x130] sm:$0xf]  ;;  %v3386_v51 = vld [vmem:[%s5285_s2 + $0x134] sm:$0xf0]  ;;  %v2361_v56 = vor.u32 %v3354_v48, %v2360_v47 }
   0xd   :  { %691 = vmatpush.bf16.msra.mxu2 %v2505_v33  ;;  %v2433_v50 = vor.u32 %v3372_v43, %v2432_v42  ;;  %v2552_v52 = vld [vmem:[%s5285_s2 + $0x1b0] sm:$0xf]  ;;  %v3402_v53 = vld [vmem:[%s5285_s2 + $0x1b4] sm:$0xf0]  ;;  %v2489_v57 = vor.u32 %v3386_v51, %v2488_v49  ;;  %v2352_v59 = vld [vmem:[%s5285_s2 + $0x20] sm:$0xf] }
   0xe   :  { %704 = vmatpush.bf16.msra.mxu3 %v2569_v34  ;;  %v2424_v54 = vld [vmem:[%s5285_s2 + $0xb0] sm:$0xf]  ;;  %v3370_v55 = vld [vmem:[%s5285_s2 + $0xb4] sm:$0xf0]  ;;  %v2553_v58 = vor.u32 %v3402_v53, %v2552_v52  ;;  %v3352_v60 = vld [vmem:[%s5285_s2 + $0x24] sm:$0xf0] }
   0xf   :  { %678 = vmatpush.bf16.msra.mxu1 %v2441_v38  ;;  %v2480_v61 = vld [vmem:[%s5285_s2 + $0x120] sm:$0xf]  ;;  %v2425_v62 = vor.u32 %v3370_v55, %v2424_v54  ;;  %v3384_v63 = vld [vmem:[%s5285_s2 + $0x124] sm:$0xf0]  ;;  %v2353_v4 = vor.u32 %v3352_v60, %v2352_v59  ;;  %v2344_v7 = vld [vmem:[%s5285_s2 + $0x10] sm:$0xf] }
  0x10   :  { %666 = vmatpush.bf16.msra.mxu0 %v2369_v44  ;;  %v2544_v0 = vld [vmem:[%s5285_s2 + $0x1a0] sm:$0xf]  ;;  %v3400_v1 = vld [vmem:[%s5285_s2 + $0x1a4] sm:$0xf0]  ;;  %v2481_v5 = vor.u32 %v3384_v63, %v2480_v61  ;;  %v3350_v8 = vld [vmem:[%s5285_s2 + $0x14] sm:$0xf0] }
  0x11   :  { %692 = vmatpush.bf16.msra.mxu2 %v2497_v45  ;;  %v2416_v2 = vld [vmem:[%s5285_s2 + $0xa0] sm:$0xf]  ;;  %v3368_v3 = vld [vmem:[%s5285_s2 + $0xa4] sm:$0xf0]  ;;  %v2545_v6 = vor.u32 %v3400_v1, %v2544_v0  ;;  %v2472_v9 = vld [vmem:[%s5285_s2 + $0x110] sm:$0xf]  ;;  %v2345_v16 = vor.u32 %v3350_v8, %v2344_v7 }
  0x12   :  { %705 = vmatpush.bf16.msra.mxu3 %v2561_v46  ;;  %v2417_v10 = vor.u32 %v3368_v3, %v2416_v2  ;;  %v3382_v11 = vld [vmem:[%s5285_s2 + $0x114] sm:$0xf0]  ;;  %v2536_v12 = vld [vmem:[%s5285_s2 + $0x190] sm:$0xf]  ;;  %v2336_v17 = vld [vmem:[%s5285_s2] sm:$0xf] }
  0x13   :  { %679 = vmatpush.bf16.msra.mxu1 %v2433_v50  ;;  %v3398_v13 = vld [vmem:[%s5285_s2 + $0x194] sm:$0xf0]  ;;  %v2408_v14 = vld [vmem:[%s5285_s2 + $0x90] sm:$0xf]  ;;  %v3348_v18 = vld [vmem:[%s5285_s2 + $0x4] sm:$0xf0]  ;;  %v2473_v20 = vor.u32 %v3382_v11, %v2472_v9 }
  0x14   :  { %667 = vmatpush.bf16.msra.mxu0 %v2361_v56  ;;  %v3366_v15 = vld [vmem:[%s5285_s2 + $0x94] sm:$0xf0]  ;;  %v2464_v19 = vld [vmem:[%s5285_s2 + $0x100] sm:$0xf]  ;;  %v2537_v21 = vor.u32 %v3398_v13, %v2536_v12  ;;  %v3380_v22 = vld [vmem:[%s5285_s2 + $0x104] sm:$0xf0]  ;;  %v2337_v32 = vor.u32 %v3348_v18, %v2336_v17 }
  0x15   :  { %693 = vmatpush.bf16.msra.mxu2 %v2489_v57  ;;  %v2528_v23 = vld [vmem:[%s5285_s2 + $0x180] sm:$0xf]  ;;  %v3396_v24 = vld [vmem:[%s5285_s2 + $0x184] sm:$0xf0]  ;;  %v2409_v25 = vor.u32 %v3366_v15, %v2408_v14  ;;  %v2648_v26 = vld [vmem:[%s5285_s2 + $0x270] sm:$0xf]  ;;  %v2465_v36 = vor.u32 %v3380_v22, %v2464_v19 }
  0x16   :  { %706 = vmatpush.bf16.msra.mxu3 %v2553_v58  ;;  %v3426_v27 = vld [vmem:[%s5285_s2 + $0x274] sm:$0xf0]  ;;  %v3361_v28 = vld [vmem:[%s5285_s2 + $0x74] sm:$0xf]  ;;  %v2394_v29 = vld [vmem:[%s5285_s2 + $0x78] sm:$0xf0]  ;;  %v2529_v37 = vor.u32 %v3396_v24, %v2528_v23 }
  0x17   :  { %680 = vmatpush.bf16.msra.mxu1 %v2425_v62  ;;  %v2400_v30 = vld [vmem:[%s5285_s2 + $0x80] sm:$0xf]  ;;  %v3364_v31 = vld [vmem:[%s5285_s2 + $0x84] sm:$0xf0]  ;;  %v53_v33 = vld [vmem:[%s5283_s0 + $0x10] sm:$0xff]  ;;  %v2649_v41 = vor.u32 %v3426_v27, %v2648_v26  ;;  %v2397_v42 = vor.u32 %v3361_v28, %v2394_v29 }
  0x18   :  { %668 = vmatpush.bf16.msra.mxu0 %v2353_v4  ;;  %v2720_v34 = vld [vmem:[%s5285_s2 + $0x300] sm:$0xf]  ;;  %v3444_v35 = vld [vmem:[%s5285_s2 + $0x304] sm:$0xf0]  ;;  %v2712_v38 = vld [vmem:[%s5285_s2 + $0x2f0] sm:$0xf]  ;;  %v2401_v46 = vor.u32 %v3364_v31, %v2400_v30  ;;  %v3977_v51 = vpack.c.bf16 %v53_v33, %v53_v33 }
  0x19   :  { %694 = vmatpush.bf16.msra.mxu2 %v2481_v5  ;;  %v3442_v39 = vld [vmem:[%s5285_s2 + $0x2f4] sm:$0xf0]  ;;  %v3377_v40 = vld [vmem:[%s5285_s2 + $0xf4] sm:$0xf]  ;;  %v2458_v43 = vld [vmem:[%s5285_s2 + $0xf8] sm:$0xf0]  ;;  %v2721_v47 = vor.u32 %v3444_v35, %v2720_v34 }
  0x1a   :  { %707 = vmatpush.bf16.msra.mxu3 %v2545_v6  ;;  %v2640_v44 = vld [vmem:[%s5285_s2 + $0x260] sm:$0xf]  ;;  %v3424_v48 = vld [vmem:[%s5285_s2 + $0x264] sm:$0xf0]  ;;  %v3359_v49 = vld [vmem:[%s5285_s2 + $0x64] sm:$0xf]  ;;  %v2713_v52 = vor.u32 %v3442_v39, %v2712_v38  ;;  %v2461_v55 = vor.u32 %v3377_v40, %v2458_v43 }
  0x1b   :  { %681 = vmatpush.bf16.msra.mxu1 %v2417_v10  ;;  %v51_v45 = vld [vmem:[%s5283_s0] sm:$0xff]  ;;  %v2386_v50 = vld [vmem:[%s5285_s2 + $0x68] sm:$0xf0]  ;;  %v54_v53 = vld [vmem:[%s5283_s0 + $0x18] sm:$0xff]  ;;  %v2641_v59 = vor.u32 %v3424_v48, %v2640_v44 }
  0x1c   :  { %669 = vmatpush.bf16.msra.mxu0 %v2345_v16  ;;  %v52_v54 = vld [vmem:[%s5283_s0 + $0x8] sm:$0xff]  ;;  %v2704_v56 = vld [vmem:[%s5285_s2 + $0x2e0] sm:$0xf]  ;;  %v3991_v58 = vpack.c.bf16 %v51_v45, %v51_v45  ;;  %v2389_v60 = vor.u32 %v3359_v49, %v2386_v50  ;;  %v3375_v61 = vld [vmem:[%s5285_s2 + $0xe4] sm:$0xf]  ;;  %v4011_v3 = vpack.c.bf16 %v54_v53, %v54_v53 }
  0x1d   :  { %695 = vmatpush.bf16.msra.mxu2 %v2473_v20  ;;  %v3440_v57 = vld [vmem:[%s5285_s2 + $0x2e4] sm:$0xf0]  ;;  %v2450_v62 = vld [vmem:[%s5285_s2 + $0xe8] sm:$0xf0]  ;;  %v2632_v63 = vld [vmem:[%s5285_s2 + $0x250] sm:$0xf]  ;;  %v4013_v4 = vpack.c.bf16 %v52_v54, %v52_v54 }
  0x1e   :  { %708 = vmatpush.bf16.msra.mxu3 %v2537_v21  ;;  %v3422_v0 = vld [vmem:[%s5285_s2 + $0x254] sm:$0xf0]  ;;  %v3357_v1 = vld [vmem:[%s5285_s2 + $0x54] sm:$0xf]  ;;  %v2378_v2 = vld [vmem:[%s5285_s2 + $0x58] sm:$0xf0]  ;;  %v2705_v5 = vor.u32 %v3440_v57, %v2704_v56  ;;  %v2453_v6 = vor.u32 %v3375_v61, %v2450_v62 }
  0x1f   :  { %682 = vmatpush.bf16.msra.mxu1 %v2409_v25  ;;  %v2696_v7 = vld [vmem:[%s5285_s2 + $0x2d0] sm:$0xf]  ;;  %v3438_v8 = vld [vmem:[%s5285_s2 + $0x2d4] sm:$0xf0]  ;;  %v2633_v9 = vor.u32 %v3422_v0, %v2632_v63  ;;  %v2381_v10 = vor.u32 %v3357_v1, %v2378_v2  ;;  %v3373_v11 = vld [vmem:[%s5285_s2 + $0xd4] sm:$0xf] }
  0x20   :  { %670 = vmatpush.bf16.msra.mxu0 %v2337_v32  ;;  %v2442_v12 = vld [vmem:[%s5285_s2 + $0xd8] sm:$0xf0]  ;;  %v2624_v13 = vld [vmem:[%s5285_s2 + $0x240] sm:$0xf]  ;;  %v3420_v14 = vld [vmem:[%s5285_s2 + $0x244] sm:$0xf0]  ;;  %v2697_v17 = vor.u32 %v3438_v8, %v2696_v7 }
  0x21   :  { %696 = vmatpush.bf16.msra.mxu2 %v2465_v36  ;;  %v3355_v15 = vld [vmem:[%s5285_s2 + $0x44] sm:$0xf]  ;;  %v2370_v16 = vld [vmem:[%s5285_s2 + $0x48] sm:$0xf0]  ;;  %v2445_v18 = vor.u32 %v3373_v11, %v2442_v12  ;;  %v2688_v19 = vld [vmem:[%s5285_s2 + $0x2c0] sm:$0xf]  ;;  %v2625_v21 = vor.u32 %v3420_v14, %v2624_v13 }
  0x22   :  { %709 = vmatpush.bf16.msra.mxu3 %v2529_v37  ;;  %v3436_v20 = vld [vmem:[%s5285_s2 + $0x2c4] sm:$0xf0]  ;;  %v2373_v22 = vor.u32 %v3355_v15, %v2370_v16  ;;  %v3371_v23 = vld [vmem:[%s5285_s2 + $0xc4] sm:$0xf]  ;;  %v2434_v24 = vld [vmem:[%s5285_s2 + $0xc8] sm:$0xf0] }
  0x23   :  { %683 = vmatpush.bf16.msra.mxu1 %v2401_v46  ;;  %671 = vmatmul.bf16.vlgmr.msra.gmra.mxu0 %v3991_v58  ;;  %v2616_v25 = vld [vmem:[%s5285_s2 + $0x230] sm:$0xf]  ;;  %v3418_v26 = vld [vmem:[%s5285_s2 + $0x234] sm:$0xf0]  ;;  %v3353_v27 = vld [vmem:[%s5285_s2 + $0x34] sm:$0xf]  ;;  %v2689_v29 = vor.u32 %v3436_v20, %v2688_v19  ;;  %v2437_v30 = vor.u32 %v3371_v23, %v2434_v24 }
  0x24   :  { %715 = vmatpush.bf16.msrb.mxu0 %v2649_v41  ;;  %697 = vmatmul.bf16.vlgmr.msra.gmra.mxu2 %v3977_v51  ;;  %v2362_v28 = vld [vmem:[%s5285_s2 + $0x38] sm:$0xf0]  ;;  %v2680_v31 = vld [vmem:[%s5285_s2 + $0x2b0] sm:$0xf]  ;;  %v3434_v32 = vld [vmem:[%s5285_s2 + $0x2b4] sm:$0xf0]  ;;  %v2617_v34 = vor.u32 %v3418_v26, %v2616_v25 }
  0x25   :  { %748 = vmatpush.bf16.msrb.mxu2 %v2721_v47  ;;  %710 = vmatmul.bf16.vlgmr.msra.gmra.mxu3 %v4011_v3  ;;  %v57_v33 = vld [vmem:[%s5283_s0 + $0x30] sm:$0xff]  ;;  %v2365_v35 = vor.u32 %v3353_v27, %v2362_v28  ;;  %v2426_v37 = vld [vmem:[%s5285_s2 + $0xb8] sm:$0xf0]  ;;  %v2608_v38 = vld [vmem:[%s5285_s2 + $0x220] sm:$0xf] }
  0x26   :  { %754 = vmatpush.bf16.msrb.mxu3 %v2397_v42  ;;  %684 = vmatmul.bf16.vlgmr.msra.gmra.mxu1 %v4013_v4  ;;  %v3369_v36 = vld [vmem:[%s5285_s2 + $0xb4] sm:$0xf]  ;;  %v3416_v39 = vld [vmem:[%s5285_s2 + $0x224] sm:$0xf0]  ;;  %v3351_v40 = vld [vmem:[%s5285_s2 + $0x24] sm:$0xf]  ;;  %v2681_v42 = vor.u32 %v3434_v32, %v2680_v31  ;;  %v4094_v43 = vpack.c.bf16 %v57_v33, %v57_v33 }
  0x27   :  { %728 = vmatpush.bf16.msrb.mxu1 %v2713_v52  ;;  %v2354_v41 = vld [vmem:[%s5285_s2 + $0x28] sm:$0xf0]  ;;  %v2429_v44 = vor.u32 %v3369_v36, %v2426_v37  ;;  %v2672_v45 = vld [vmem:[%s5285_s2 + $0x2a0] sm:$0xf]  ;;  %v3432_v46 = vld [vmem:[%s5285_s2 + $0x2a4] sm:$0xf0]  ;;  %v2609_v47 = vor.u32 %v3416_v39, %v2608_v38 }
  0x28   :  { %716 = vmatpush.bf16.msrb.mxu0 %v2641_v59  ;;  %v2357_v48 = vor.u32 %v3351_v40, %v2354_v41  ;;  %v3367_v49 = vld [vmem:[%s5285_s2 + $0xa4] sm:$0xf]  ;;  %v2418_v50 = vld [vmem:[%s5285_s2 + $0xa8] sm:$0xf0]  ;;  %v2600_v52 = vld [vmem:[%s5285_s2 + $0x210] sm:$0xf]  ;;  %v2673_v56 = vor.u32 %v3432_v46, %v2672_v45 }
  0x29   :  { %767 = vmatpush.bf16.msra.mxu2 %v2461_v55  ;;  %v3414_v53 = vld [vmem:[%s5285_s2 + $0x214] sm:$0xf0]  ;;  %v3349_v54 = vld [vmem:[%s5285_s2 + $0x14] sm:$0xf]  ;;  %v2346_v55 = vld [vmem:[%s5285_s2 + $0x18] sm:$0xf0]  ;;  %v2421_v57 = vor.u32 %v3367_v49, %v2418_v50 }
  0x2a   :  { %755 = vmatpush.bf16.msrb.mxu3 %v2389_v60  ;;  %v2664_v59 = vld [vmem:[%s5285_s2 + $0x290] sm:$0xf]  ;;  %v3430_v60 = vld [vmem:[%s5285_s2 + $0x294] sm:$0xf0]  ;;  %v3365_v61 = vld [vmem:[%s5285_s2 + $0x94] sm:$0xf]  ;;  %v2601_v62 = vor.u32 %v3414_v53, %v2600_v52  ;;  %v2349_v63 = vor.u32 %v3349_v54, %v2346_v55 }
  0x2b   :  { %729 = vmatpush.bf16.msrb.mxu1 %v2705_v5  ;;  %v2410_v0 = vld [vmem:[%s5285_s2 + $0x98] sm:$0xf0]  ;;  %v2592_v1 = vld [vmem:[%s5285_s2 + $0x200] sm:$0xf]  ;;  %v3412_v2 = vld [vmem:[%s5285_s2 + $0x204] sm:$0xf0]  ;;  %v2665_v8 = vor.u32 %v3430_v60, %v2664_v59 }
  0x2c   :  { %717 = vmatpush.bf16.msrb.mxu0 %v2633_v9  ;;  %v3347_v5 = vld [vmem:[%s5285_s2 + $0x4] sm:$0xf]  ;;  %v3393_v7 = vld [vmem:[%s5285_s2 + $0x174] sm:$0xf]  ;;  %v2522_v9 = vld [vmem:[%s5285_s2 + $0x178] sm:$0xf0]  ;;  %v2413_v12 = vor.u32 %v3365_v61, %v2410_v0  ;;  %v2593_v16 = vor.u32 %v3412_v2, %v2592_v1 }
  0x2d   :  { %768 = vmatpush.bf16.msra.mxu2 %v2453_v6  ;;  %v2338_v6 = vld [vmem:[%s5285_s2 + $0x8] sm:$0xf0]  ;;  %v2650_v11 = vld [vmem:[%s5285_s2 + $0x278] sm:$0xf0]  ;;  %v2656_v13 = vld [vmem:[%s5285_s2 + $0x280] sm:$0xf] }
  0x2e   :  { %756 = vmatpush.bf16.msrb.mxu3 %v2381_v10  ;;  %v3425_v10 = vld [vmem:[%s5285_s2 + $0x274] sm:$0xf]  ;;  %v3428_v14 = vld [vmem:[%s5285_s2 + $0x284] sm:$0xf0]  ;;  %v55_v15 = vld [vmem:[%s5283_s0 + $0x20] sm:$0xff] }
  0x2f   :  { %730 = vmatpush.bf16.msrb.mxu1 %v2697_v17  ;;  %v2341_v17 = vor.u32 %v3347_v5, %v2338_v6  ;;  %v2402_v19 = vld [vmem:[%s5285_s2 + $0x88] sm:$0xf0]  ;;  %v3409_v20 = vld [vmem:[%s5285_s2 + $0x1f4] sm:$0xf]  ;;  %v2586_v23 = vld [vmem:[%s5285_s2 + $0x1f8] sm:$0xf0]  ;;  %v2657_v26 = vor.u32 %v3428_v14, %v2656_v13 }
  0x30   :  { %718 = vmatpush.bf16.msrb.mxu0 %v2625_v21  ;;  %v2525_v21 = vor.u32 %v3393_v7, %v2522_v9  ;;  %v3441_v24 = vld [vmem:[%s5285_s2 + $0x2f4] sm:$0xf]  ;;  %v2714_v25 = vld [vmem:[%s5285_s2 + $0x2f8] sm:$0xf0]  ;;  %v56_v27 = vld [vmem:[%s5283_s0 + $0x28] sm:$0xff] }
  0x31   :  { %769 = vmatpush.bf16.msra.mxu2 %v2445_v18  ;;  %v3363_v18 = vld [vmem:[%s5285_s2 + $0x84] sm:$0xf]  ;;  %v2642_v33 = vld [vmem:[%s5285_s2 + $0x268] sm:$0xf0]  ;;  %v4205_v37 = vpack.c.bf16 %v56_v27, %v56_v27  ;;  %v2506_v45 = vld [vmem:[%s5285_s2 + $0x158] sm:$0xf0] }
  0x32   :  { %757 = vmatpush.bf16.msrb.mxu3 %v2373_v22  ;;  %v2653_v22 = vor.u32 %v3425_v10, %v2650_v11  ;;  %v3391_v28 = vld [vmem:[%s5285_s2 + $0x164] sm:$0xf]  ;;  %v2405_v31 = vor.u32 %v3363_v18, %v2402_v19  ;;  %v2578_v39 = vld [vmem:[%s5285_s2 + $0x1e8] sm:$0xf0]  ;;  %v3421_v46 = vld [vmem:[%s5285_s2 + $0x254] sm:$0xf] }
  0x33   :  { %731 = vmatpush.bf16.msrb.mxu1 %v2689_v29  ;;  %v2514_v29 = vld [vmem:[%s5285_s2 + $0x168] sm:$0xf0]  ;;  %v3423_v32 = vld [vmem:[%s5285_s2 + $0x264] sm:$0xf]  ;;  %v3405_v50 = vld [vmem:[%s5285_s2 + $0x1d4] sm:$0xf] }
  0x34   :  { %719 = vmatpush.bf16.msrb.mxu0 %v2617_v34  ;;  %2726 = vmatmul.msk.bf16.vlgmr.msrb.gmra.mxu2 %vm659_vm0, %v4094_v43  ;;  %v2589_v34 = vor.u32 %v3409_v20, %v2586_v23  ;;  %v3407_v36 = vld [vmem:[%s5285_s2 + $0x1e4] sm:$0xf]  ;;  %v2517_v38 = vor.u32 %v3391_v28, %v2514_v29  ;;  %v2706_v41 = vld [vmem:[%s5285_s2 + $0x2e8] sm:$0xf0]  ;;  %v2570_v52 = vld [vmem:[%s5285_s2 + $0x1d8] sm:$0xf0] }
  0x35   :  { %770 = vmatpush.bf16.msra.mxu2 %v2437_v30  ;;  %v4194_v30 = vpack.c.bf16 %v55_v15, %v55_v15  ;;  %v3439_v40 = vld [vmem:[%s5285_s2 + $0x2e4] sm:$0xf]  ;;  %v3437_v54 = vld [vmem:[%s5285_s2 + $0x2d4] sm:$0xf]  ;;  %v2698_v55 = vld [vmem:[%s5285_s2 + $0x2d8] sm:$0xf0] }
  0x36   :  { %758 = vmatpush.bf16.msrb.mxu3 %v2365_v35  ;;  %v2717_v35 = vor.u32 %v3441_v24, %v2714_v25  ;;  %v2709_v49 = vor.u32 %v3439_v40, %v2706_v41  ;;  %v2498_v59 = vld [vmem:[%s5285_s2 + $0x148] sm:$0xf0]  ;;  %v3419_v60 = vld [vmem:[%s5285_s2 + $0x244] sm:$0xf] }
  0x37   :  { %732 = vmatpush.bf16.msrb.mxu1 %v2681_v42  ;;  %v2645_v42 = vor.u32 %v3423_v32, %v2642_v33  ;;  %v2626_v61 = vld [vmem:[%s5285_s2 + $0x248] sm:$0xf0] }
  0x38   :  { %720 = vmatpush.bf16.msrb.mxu0 %v2609_v47  ;;  %v2634_v47 = vld [vmem:[%s5285_s2 + $0x258] sm:$0xf0] }
  0x39   :  { %771 = vmatpush.bf16.msra.mxu2 %v2429_v44  ;;  %v3389_v44 = vld [vmem:[%s5285_s2 + $0x154] sm:$0xf] }
  0x3a   :  { %759 = vmatpush.bf16.msrb.mxu3 %v2357_v48  ;;  %v2581_v48 = vor.u32 %v3407_v36, %v2578_v39  ;;  %v2509_v53 = vor.u32 %v3389_v44, %v2506_v45 }
  0x3b   :  { %733 = vmatpush.bf16.msrb.mxu1 %v2673_v56  ;;  %v3387_v56 = vld [vmem:[%s5285_s2 + $0x144] sm:$0xf] }
  0x3c   :  { %721 = vmatpush.bf16.msrb.mxu0 %v2601_v62 }
  0x3d   :  { %772 = vmatpush.bf16.msra.mxu2 %v2421_v57  ;;  %v2637_v57 = vor.u32 %v3421_v46, %v2634_v47 }
  0x3e   :  { %760 = vmatpush.bf16.msrb.mxu3 %v2349_v63 }
  0x3f   :  { %734 = vmatpush.bf16.msrb.mxu1 %v2665_v8 }
  0x40   :  { %722 = vmatpush.bf16.msrb.mxu0 %v2593_v16 }
  0x41   :  { %773 = vmatpush.bf16.msra.mxu2 %v2413_v12 }
  0x42   :  { %761 = vmatpush.bf16.msrb.mxu3 %v2341_v17 }
  0x43   :  { %735 = vmatpush.bf16.msrb.mxu1 %v2657_v26  ;;  %723 = vmatmul.bf16.vlgmr.msrb.gmra.mxu0 %v4194_v30 }
  0x44   :  { %780 = vmatpush.bf16.msra.mxu0 %v2525_v21 }
  0x45   :  { %774 = vmatpush.bf16.msra.mxu2 %v2405_v31  ;;  %762 = vmatmul.bf16.vlgmr.msrb.gmra.mxu3 %v3991_v58 }
  0x46   :  { %806 = vmatpush.bf16.msra.mxu3 %v2653_v22  ;;  %736 = vmatmul.bf16.vlgmr.msrb.gmra.mxu1 %v4205_v37 }
  0x47   :  { %793 = vmatpush.bf16.msra.mxu1 %v2589_v34 }
  0x48   :  { %781 = vmatpush.bf16.msra.mxu0 %v2517_v38  ;;  %775 = vmatmul.bf16.vlgmr.msra.gmra.mxu2 %v4013_v4 }
  0x49   :  { %819 = vmatpush.bf16.msrb.mxu2 %v2717_v35 }
  0x4a   :  { %807 = vmatpush.bf16.msra.mxu3 %v2645_v42 }
  0x4b   :  { %21 = vsyncpa [#allocation3], 0  ;;  %794 = vmatpush.bf16.msra.mxu1 %v2581_v48  ;;  %v2573_v62 = vor.u32 %v3405_v50, %v2570_v52  ;;  %v2701_v63 = vor.u32 %v3437_v54, %v2698_v55  ;;  %v3403_v0 = vld [vmem:[%s5285_s2 + $0x1c4] sm:$0xf]  ;;  %v2501_v1 = vor.u32 %v3387_v56, %v2498_v59  ;;  %v2562_v4 = vld [vmem:[%s5285_s2 + $0x1c8] sm:$0xf0]  ;;  %v2629_v5 = vor.u32 %v3419_v60, %v2626_v61 }
  0x4c   :  { %782 = vmatpush.bf16.msra.mxu0 %v2509_v53  ;;  %v3435_v2 = vld [vmem:[%s5285_s2 + $0x2c4] sm:$0xf]  ;;  %v2690_v58 = vld [vmem:[%s5285_s2 + $0x2c8] sm:$0xf0]  ;;  %v3385_v6 = vld [vmem:[%s5285_s2 + $0x134] sm:$0xf]  ;;  %v2565_v10 = vor.u32 %v3403_v0, %v2562_v4 }
  0x4d   :  { %820 = vmatpush.bf16.msrb.mxu2 %v2709_v49  ;;  %v2490_v7 = vld [vmem:[%s5285_s2 + $0x138] sm:$0xf0]  ;;  %v3417_v8 = vld [vmem:[%s5285_s2 + $0x234] sm:$0xf]  ;;  %v2693_v11 = vor.u32 %v3435_v2, %v2690_v58  ;;  %v3383_v18 = vld [vmem:[%s5285_s2 + $0x124] sm:$0xf] }
  0x4e   :  { %808 = vmatpush.bf16.msra.mxu3 %v2637_v57  ;;  %v2618_v9 = vld [vmem:[%s5285_s2 + $0x238] sm:$0xf0]  ;;  %v3401_v12 = vld [vmem:[%s5285_s2 + $0x1b4] sm:$0xf]  ;;  %v2493_v13 = vor.u32 %v3385_v6, %v2490_v7  ;;  %v2482_v19 = vld [vmem:[%s5285_s2 + $0x128] sm:$0xf0] }
  0x4f   :  { %795 = vmatpush.bf16.msra.mxu1 %v2573_v62  ;;  %v2554_v14 = vld [vmem:[%s5285_s2 + $0x1b8] sm:$0xf0]  ;;  %v3433_v15 = vld [vmem:[%s5285_s2 + $0x2b4] sm:$0xf]  ;;  %v2621_v17 = vor.u32 %v3417_v8, %v2618_v9  ;;  %v3415_v20 = vld [vmem:[%s5285_s2 + $0x224] sm:$0xf]  ;;  %v2485_v25 = vor.u32 %v3383_v18, %v2482_v19 }
  0x50   :  { %783 = vmatpush.bf16.msra.mxu0 %v2501_v1  ;;  %v2682_v16 = vld [vmem:[%s5285_s2 + $0x2b8] sm:$0xf0]  ;;  %v2610_v21 = vld [vmem:[%s5285_s2 + $0x228] sm:$0xf0]  ;;  %v2557_v22 = vor.u32 %v3401_v12, %v2554_v14  ;;  %v3399_v24 = vld [vmem:[%s5285_s2 + $0x1a4] sm:$0xf] }
  0x51   :  { %821 = vmatpush.bf16.msrb.mxu2 %v2701_v63  ;;  %v2685_v23 = vor.u32 %v3433_v15, %v2682_v16  ;;  %v2546_v26 = vld [vmem:[%s5285_s2 + $0x1a8] sm:$0xf0]  ;;  %v3431_v27 = vld [vmem:[%s5285_s2 + $0x2a4] sm:$0xf]  ;;  %v2613_v29 = vor.u32 %v3415_v20, %v2610_v21  ;;  %v3381_v31 = vld [vmem:[%s5285_s2 + $0x114] sm:$0xf] }
  0x52   :  { %809 = vmatpush.bf16.msra.mxu3 %v2629_v5  ;;  %v2674_v28 = vld [vmem:[%s5285_s2 + $0x2a8] sm:$0xf0]  ;;  %v2474_v32 = vld [vmem:[%s5285_s2 + $0x118] sm:$0xf0]  ;;  %v3413_v33 = vld [vmem:[%s5285_s2 + $0x214] sm:$0xf]  ;;  %v2549_v35 = vor.u32 %v3399_v24, %v2546_v26 }
  0x53   :  { %796 = vmatpush.bf16.msra.mxu1 %v2565_v10  ;;  %v2602_v34 = vld [vmem:[%s5285_s2 + $0x218] sm:$0xf0]  ;;  %v2677_v36 = vor.u32 %v3431_v27, %v2674_v28  ;;  %v3397_v38 = vld [vmem:[%s5285_s2 + $0x194] sm:$0xf]  ;;  %v2477_v39 = vor.u32 %v3381_v31, %v2474_v32  ;;  %v3379_v45 = vld [vmem:[%s5285_s2 + $0x104] sm:$0xf] }
  0x54   :  { %784 = vmatpush.bf16.msra.mxu0 %v2493_v13  ;;  %v2538_v40 = vld [vmem:[%s5285_s2 + $0x198] sm:$0xf0]  ;;  %v3429_v41 = vld [vmem:[%s5285_s2 + $0x294] sm:$0xf]  ;;  %v2605_v44 = vor.u32 %v3413_v33, %v2602_v34  ;;  %v2466_v46 = vld [vmem:[%s5285_s2 + $0x108] sm:$0xf0] }
  0x55   :  { %822 = vmatpush.bf16.msrb.mxu2 %v2693_v11  ;;  %v2666_v42 = vld [vmem:[%s5285_s2 + $0x298] sm:$0xf0]  ;;  %v3411_v47 = vld [vmem:[%s5285_s2 + $0x204] sm:$0xf]  ;;  %v2594_v48 = vld [vmem:[%s5285_s2 + $0x208] sm:$0xf0]  ;;  %v2541_v52 = vor.u32 %v3397_v38, %v2538_v40  ;;  %v2469_v54 = vor.u32 %v3379_v45, %v2466_v46 }
  0x56   :  { %810 = vmatpush.bf16.msra.mxu3 %v2621_v17  ;;  %v3443_v49 = vld [vmem:[%s5285_s2 + $0x304] sm:$0xf]  ;;  %v2722_v50 = vld [vmem:[%s5285_s2 + $0x308] sm:$0xf0]  ;;  %v2669_v53 = vor.u32 %v3429_v41, %v2666_v42  ;;  %v2597_v57 = vor.u32 %v3411_v47, %v2594_v48  ;;  %v3452_v0 = vld [vmem:[%s5287_s4 + $0x38] sm:$0xff]  ;;  %vm1063_vm1 = vcmask 523264  }
  0x57   :  { %797 = vmatpush.bf16.msra.mxu1 %v2557_v22  ;;  %v3395_v55 = vld [vmem:[%s5285_s2 + $0x184] sm:$0xf]  ;;  %v2530_v56 = vld [vmem:[%s5285_s2 + $0x188] sm:$0xf0]  ;;  %v2725_v61 = vor.u32 %v3443_v49, %v2722_v50  ;;  %v3451_v1 = vld [vmem:[%s5287_s4 + $0x30] sm:$0xff]  ;;  %s2321_s23 = sshll.u32 %s5297_s14, 4  ;;  %s2322_s23 = int_to_ptr.hbm [resolvable:$true] %s2321_s23 }
  0x58   :  { %785 = vmatpush.bf16.msra.mxu0 %v2485_v25  ;;  %v3427_v59 = vld [vmem:[%s5285_s2 + $0x284] sm:$0xf]  ;;  %v2658_v60 = vld [vmem:[%s5285_s2 + $0x288] sm:$0xf0]  ;;  %v2533_v62 = vor.u32 %v3395_v55, %v2530_v56  ;;  %v163_v6 = vld [vmem:[%s5286_s3] sm:$0x3] }
  0x59   :  { %823 = vmatpush.bf16.msrb.mxu2 %v2685_v23  ;;  %v2661_v63 = vor.u32 %v3427_v59, %v2658_v60  ;;  %v3445_v58 = vld [vmem:[%s5287_s4] sm:$0xff]  ;;  %v3460_v9 = vld [vmem:[%s5287_s4 + $0x78] sm:$0xff]  ;;  %v165_v11 = vperm.slane %v163_v6, 0  ;;  %v3459_v13 = vld [vmem:[%s5287_s4 + $0x70] sm:$0xff]  ;;  %v166_v42 = vperm.slane %v163_v6, 1 }
  0x5a   :  { %811 = vmatpush.bf16.msra.mxu3 %v2613_v29  ;;  %v3458_v19 = vld [vmem:[%s5287_s4 + $0x68] sm:$0xff]  ;;  %v3457_v22 = vld [vmem:[%s5287_s4 + $0x60] sm:$0xff]  ;;  %v3456_v27 = vld [vmem:[%s5287_s4 + $0x58] sm:$0xff] }
  0x5b   :  { %798 = vmatpush.bf16.msra.mxu1 %v2549_v35  ;;  %v3455_v32 = vld [vmem:[%s5287_s4 + $0x50] sm:$0xff]  ;;  %v3454_v38 = vld [vmem:[%s5287_s4 + $0x48] sm:$0xff] }
  0x5c   :  { %786 = vmatpush.bf16.msra.mxu0 %v2477_v39  ;;  %v3453_v39 = vld [vmem:[%s5287_s4 + $0x40] sm:$0xff] }
  0x5d   :  { %824 = vmatpush.bf16.msrb.mxu2 %v2677_v36 }
  0x5e   :  { %812 = vmatpush.bf16.msra.mxu3 %v2605_v44 }
  0x5f   :  { %799 = vmatpush.bf16.msra.mxu1 %v2541_v52 }
  0x60   :  { %787 = vmatpush.bf16.msra.mxu0 %v2469_v54 }
  0x61   :  { %825 = vmatpush.bf16.msrb.mxu2 %v2669_v53 }
  0x62   :  { %813 = vmatpush.bf16.msra.mxu3 %v2597_v57 }
  0x63   :  { %800 = vmatpush.bf16.msra.mxu1 %v2533_v62  ;;  %788 = vmatmul.bf16.vlgmr.msra.gmra.mxu0 %v3977_v51  ;;  %v3450_v51 = vld [vmem:[%s5287_s4 + $0x28] sm:$0xff] }
  0x64   :  { %839 = vmatpush.bf16.msrb.mxu0 %v2725_v61 }
  0x65   :  { %814 = vmatmul.bf16.vlgmr.msra.gmra.mxu3 %v4194_v30  ;;  %826 = vmatpush.bf16.msrb.mxu2 %v2661_v63  ;;  %v3447_v30 = vld [vmem:[%s5287_s4 + $0x10] sm:$0xff] }
  0x66   :  { %801 = vmatmul.bf16.vlgmr.msra.gmra.mxu1 %v4011_v3  ;;  %v3449_v3 = vld [vmem:[%s5287_s4 + $0x20] sm:$0xff]  ;;  %994 = vmatpush.bf16.msrb.mxu3 %v3460_v9 }
  0x67   :  { %981 = vmatpush.bf16.msrb.mxu1 %v3452_v0 }
  0x68   :  { %827 = vmatmul.bf16.vlgmr.msrb.gmra.mxu2 %v4205_v37  ;;  %v3446_v37 = vld [vmem:[%s5287_s4 + $0x8] sm:$0xff] }
  0x6a   :  { %995 = vmatpush.bf16.msrb.mxu3 %v3459_v13 }
  0x6b   :  { %982 = vmatpush.bf16.msrb.mxu1 %v3451_v1  ;;  %v2818_v1 = vld [vmem:[%s5289_s6 + $0x30] sm:$0xf] }
  0x6e   :  { %996 = vmatpush.bf16.msrb.mxu3 %v3458_v19 }
  0x6f   :  { %983 = vmatpush.bf16.msrb.mxu1 %v3450_v51  ;;  %v3468_v51 = vld [vmem:[%s5289_s6 + $0x34] sm:$0xf0] }
  0x72   :  { %997 = vmatpush.bf16.msrb.mxu3 %v3457_v22  ;;  %v3476_v22 = vld [vmem:[%s5291_s8 + $0x38] sm:$0xff] }
  0x73   :  { %2727 = vmatmul.msk.bf16.vlgmr.msrb.gmra.mxu0 %vm659_vm0, %v4094_v43  ;;  %984 = vmatpush.bf16.msrb.mxu1 %v3449_v3  ;;  %v3448_v43 = vld [vmem:[%s5287_s4 + $0x18] sm:$0xff]  ;;  %v3467_v3 = vld [vmem:[%s5289_s6 + $0x34] sm:$0xf] }
  0x76   :  { %998 = vmatpush.bf16.msrb.mxu3 %v3456_v27 }
  0x77   :  { %985 = vmatpush.bf16.msrb.mxu1 %v3448_v43  ;;  %v2819_v43 = vor.u32 %v3468_v51, %v2818_v1  ;;  %v3480_v1 = vld [vmem:[%s5293_s10 + $0x14] sm:$0xf0] }
  0x79   :  { %1071 = vmatpush.bf16.msra.mxu0 %v2819_v43  ;;  %v3478_v43 = vld [vmem:[%s5293_s10 + $0x4] sm:$0xf0] }
  0x7a   :  { %999 = vmatpush.bf16.msrb.mxu3 %v3455_v32  ;;  %v3474_v32 = vld [vmem:[%s5291_s8 + $0x28] sm:$0xff] }
  0x7b   :  { %986 = vmatpush.bf16.msrb.mxu1 %v3447_v30  ;;  %v2820_v30 = vld [vmem:[%s5289_s6 + $0x38] sm:$0xf0] }
  0x7e   :  { %1000 = vmatpush.bf16.msrb.mxu3 %v3454_v38  ;;  %v3469_v38 = vld [vmem:[%s5291_s8] sm:$0xff] }
  0x7f   :  { %987 = vmatpush.bf16.msrb.mxu1 %v3446_v37  ;;  %v2810_v37 = vld [vmem:[%s5289_s6 + $0x20] sm:$0xf] }
  0x82   :  { %1001 = vmatpush.bf16.msrb.mxu3 %v3453_v39  ;;  %v1017_v39 = vld [vmem:[%s5290_s7] sm:$0x3] }
  0x83   :  { %988 = vmatpush.bf16.msrb.mxu1 %v3445_v58  ;;  %v3465_v58 = vld [vmem:[%s5289_s6 + $0x24] sm:$0xf] }
  0xa0   :  { %v672_v4 = vpop.f32.mrf.mxu0 }
  0xa1   :  { %v673_v14 = vadd.f32 %v672_v4, %v165_v11  ;;  %v3466_v4 = vld [vmem:[%s5289_s6 + $0x24] sm:$0xf0]  ;;  %v3464_v11 = vld [vmem:[%s5289_s6 + $0x14] sm:$0xf0] }
  0xa2   :  { %v2811_v6 = vor.u32 %v3466_v4, %v2810_v37  ;;  %v3483_v37 = vld [vmem:[%s5293_s10 + $0x34] sm:$0xf]  ;;  %v2886_v4 = vld [vmem:[%s5293_s10 + $0x38] sm:$0xf0] }
  0xa3   :  { %v685_v2 = vpop.f32.mrf.mxu1 }
  0xa4   :  { %v686_v16 = vadd.f32 %v685_v2, %v673_v14  ;;  %v2823_v2 = vor.u32 %v3467_v3, %v2820_v30  ;;  %1072 = vmatpush.bf16.msra.mxu0 %v2811_v6  ;;  %v2804_v14 = vld [vmem:[%s5289_s6 + $0x18] sm:$0xf0]  ;;  %v2860_v3 = vld [vmem:[%s5293_s10] sm:$0xf] }
  0xa5   :  { %v2861_v30 = vor.u32 %v3478_v43, %v2860_v3 }
  0xa6   :  { %1084 = vmatpush.bf16.msra.mxu2 %v2823_v2  ;;  %v2889_v2 = vor.u32 %v3483_v37, %v2886_v4  ;;  %v3036_v4 = vld [vmem:[%s5295_s12 + $0x134] sm:$0xf0] }
  0xa7   :  { %v698_v5 = vpop.f32.mrf.mxu2 }
  0xa8   :  { %v711_v7 = vpop.f32.mrf.mxu3  ;;  %v674_v8 = vpop.f32.mrf.mxu0  ;;  %v699_v18 = vadd.f32 %v698_v5, %v686_v16  ;;  %v2812_v5 = vld [vmem:[%s5289_s6 + $0x28] sm:$0xf0]  ;;  %v2794_v16 = vld [vmem:[%s5289_s6] sm:$0xf] }
  0xaa   :  { %v712_v20 = vadd.f32 %v711_v7, %v699_v18  ;;  %v2815_v7 = vor.u32 %v3465_v58, %v2812_v5  ;;  %v3461_v18 = vld [vmem:[%s5289_s6 + $0x4] sm:$0xf]  ;;  %v2878_v5 = vld [vmem:[%s5293_s10 + $0x28] sm:$0xf0] }
  0xab   :  { %v687_v10 = vpop.f32.mrf.mxu1  ;;  %v3481_v58 = vld [vmem:[%s5293_s10 + $0x24] sm:$0xf] }
  0xac   :  { %1085 = vmatpush.bf16.msra.mxu2 %v2815_v7  ;;  %v2802_v10 = vld [vmem:[%s5289_s6 + $0x10] sm:$0xf]  ;;  %v2881_v6 = vor.u32 %v3481_v58, %v2878_v5  ;;  %v3479_v7 = vld [vmem:[%s5293_s10 + $0x14] sm:$0xf]  ;;  %v3202_v58 = vld [vmem:[%s5295_s12 + $0x268] sm:$0xf] }
  0xad   :  { %v2803_v13 = vor.u32 %v3464_v11, %v2802_v10  ;;  %v3477_v10 = vld [vmem:[%s5293_s10 + $0x4] sm:$0xf]  ;;  %v2862_v11 = vld [vmem:[%s5293_s10 + $0x8] sm:$0xf0] }
  0xae   :  { %v3565_v5 = vld [vmem:[%s5295_s12 + $0x280] sm:$0xf0] }
  0xaf   :  { %v700_v12 = vpop.f32.mrf.mxu2  ;;  %1073 = vmatpush.bf16.msra.mxu0 %v2803_v13  ;;  %v3090_v13 = vld [vmem:[%s5295_s12 + $0x188] sm:$0xf] }
  0xb0   :  { %v713_v15 = vpop.f32.mrf.mxu3  ;;  %v3463_v12 = vld [vmem:[%s5289_s6 + $0x14] sm:$0xf] }
  0xb1   :  { %v2807_v15 = vor.u32 %v3463_v12, %v2804_v14  ;;  %v2865_v12 = vor.u32 %v3477_v10, %v2862_v11  ;;  %v3537_v14 = vld [vmem:[%s5295_s12 + $0x1a0] sm:$0xf0]  ;;  %v3495_v10 = vld [vmem:[%s5295_s12 + $0x50] sm:$0xf0] }
  0xb3   :  { %1086 = vmatpush.bf16.msra.mxu2 %v2807_v15  ;;  %v3091_v15 = vor.u32 %v3537_v14, %v3090_v13  ;;  %v3203_v13 = vor.u32 %v3565_v5, %v3202_v58  ;;  %v3008_v14 = vld [vmem:[%s5295_s12 + $0xfc] sm:$0xf0]  ;;  %v3517_v58 = vld [vmem:[%s5295_s12 + $0x100] sm:$0xf0] }
  0xb4   :  { %v3485_v5 = vld [vmem:[%s5295_s12 + $0x4] sm:$0xf] }
  0xb5   :  { %1992 = vmatpush.bf16.msra.mxu3 %v3091_v15 }
  0xb7   :  { %v750_v17 = vpop.f32.mrf.mxu2 }
  0xbf   :  { %v752_v24 = vpop.f32.mrf.mxu2 }
  0xc0   :  { %v724_v21 = vpop.f32.mrf.mxu0  ;;  %v3598_v24 = vld [vmem:[%s5288_s5] ss:$0 sm:$0xff] }
  0xc1   :  { %v725_v23 = vadd.f32 %v724_v21, %v712_v20  ;;  %v2796_v20 = vld [vmem:[%s5289_s6 + $0x8] sm:$0xf0] }
  0xc2   :  { %v2799_v21 = vor.u32 %v3461_v18, %v2796_v20  ;;  %v3523_v20 = vld [vmem:[%s5295_s12 + $0x130] sm:$0xf0] }
  0xc3   :  { %v737_v25 = vpop.f32.mrf.mxu1 }
  0xc4   :  { %v738_v26 = vadd.f32 %v737_v25, %v725_v23  ;;  %1087 = vmatpush.bf16.msra.mxu2 %v2799_v21  ;;  %v3475_v23 = vld [vmem:[%s5291_s8 + $0x30] sm:$0xff]  ;;  %v3599_v21 = vld [vmem:[%s5292_s9] ss:$0 sm:$0xff] }
  0xc6   :  { %v751_v28 = vadd.f32 %v750_v17, %v738_v26  ;;  %v3462_v17 = vld [vmem:[%s5289_s6 + $0x4] sm:$0xf0] }
  0xc7   :  { %v2795_v19 = vor.u32 %v3462_v17, %v2794_v16  ;;  %v3062_v16 = vld [vmem:[%s5295_s12 + $0x150] sm:$0xf]  ;;  %v3530_v17 = vld [vmem:[%s5295_s12 + $0x168] sm:$0xf0] }
  0xc8   :  { %v845_v29 = vmax.f32 %v751_v28, 0.0  ;;  %v726_v31 = vpop.f32.mrf.mxu0  ;;  %v763_v35 = vpop.f32.mrf.mxu3  ;;  %v3063_v18 = vor.u32 %v3530_v17, %v3062_v16  ;;  %v3174_v16 = vld [vmem:[%s5295_s12 + $0x230] sm:$0xf]  ;;  %v3558_v17 = vld [vmem:[%s5295_s12 + $0x248] sm:$0xf0] }
  0xc9   :  { %v764_v44 = vadd.f32 %v763_v35, %v166_v42  ;;  %1074 = vmatpush.bf16.msra.mxu0 %v2795_v19  ;;  %v3471_v35 = vld [vmem:[%s5291_s8 + $0x10] sm:$0xff]  ;;  %v2876_v42 = vld [vmem:[%s5293_s10 + $0x20] sm:$0xf]  ;;  %v3034_v19 = vld [vmem:[%s5295_s12 + $0x118] sm:$0xf] }
  0xca   :  { %v847_v33 = vpack.c.bf16 %v845_v29, %v845_v29  ;;  %1993 = vmatpush.bf16.msra.mxu3 %v3063_v18 }
  0xcb   :  { %v776_v34 = vpop.f32.mrf.mxu2  ;;  %v739_v36 = vpop.f32.mrf.mxu1 }
  0xcc   :  { %989 = vmatmul.bf16.vlgmr.msrb.gmra.mxu1 %v847_v33  ;;  %v777_v46 = vadd.f32 %v776_v34, %v764_v44  ;;  %v3473_v33 = vld [vmem:[%s5291_s8 + $0x20] sm:$0xff]  ;;  %v3472_v34 = vld [vmem:[%s5291_s8 + $0x18] sm:$0xff]  ;;  %v3470_v36 = vld [vmem:[%s5291_s8 + $0x8] sm:$0xff] }
  0xcd   :  { %1170 = vmatpush.bf16.msrb.mxu0 %v3476_v22  ;;  %v3314_v22 = vld [vmem:[%s5295_s12 + $0x348] sm:$0xf] }
  0xd0   :  { %v765_v41 = vpop.f32.mrf.mxu3 }
  0xd1   :  { %1171 = vmatpush.bf16.msrb.mxu0 %v3475_v23  ;;  %v3484_v41 = vld [vmem:[%s5293_s10 + $0x34] sm:$0xf0]  ;;  %v3593_v23 = vld [vmem:[%s5295_s12 + $0x360] sm:$0xf0] }
  0xd3   :  { %v778_v40 = vpop.f32.mrf.mxu2 }
  0xd4   :  { %v2884_v40 = vld [vmem:[%s5293_s10 + $0x30] sm:$0xf] }
  0xd5   :  { %1172 = vmatpush.bf16.msrb.mxu0 %v3474_v32  ;;  %v2885_v44 = vor.u32 %v3484_v41, %v2884_v40  ;;  %v3286_v32 = vld [vmem:[%s5295_s12 + $0x310] sm:$0xf]  ;;  %v3583_v40 = vld [vmem:[%s5295_s12 + $0x314] sm:$0xf] }
  0xd6   :  { %v3288_v41 = vld [vmem:[%s5295_s12 + $0x32c] sm:$0xf0] }
  0xd7   :  { %1246 = vmatpush.bf16.msrb.mxu2 %v2885_v44  ;;  %v3291_v44 = vor.u32 %v3583_v40, %v3288_v41  ;;  %v2952_v40 = vld [vmem:[%s5295_s12 + $0x8c] sm:$0xf0]  ;;  %v3070_v41 = vld [vmem:[%s5295_s12 + $0x158] sm:$0xf] }
  0xd9   :  { %1173 = vmatpush.bf16.msrb.mxu0 %v3473_v33 }
  0xdd   :  { %1174 = vmatpush.bf16.msrb.mxu0 %v3472_v34  ;;  %v3534_v34 = vld [vmem:[%s5295_s12 + $0x18c] sm:$0xf] }
  0xe0   :  { %v789_v45 = vpop.f32.mrf.mxu0 }
  0xe1   :  { %v790_v48 = vadd.f32 %v789_v45, %v777_v46  ;;  %1175 = vmatpush.bf16.msrb.mxu0 %v3471_v35  ;;  %v3482_v45 = vld [vmem:[%s5293_s10 + $0x24] sm:$0xf0]  ;;  %v1019_v46 = vperm.slane %v1017_v39, 0  ;;  %v3586_v35 = vld [vmem:[%s5295_s12 + $0x328] sm:$0xf0] }
  0xe3   :  { %v802_v47 = vpop.f32.mrf.mxu1 }
  0xe4   :  { %v803_v52 = vadd.f32 %v802_v47, %v790_v48  ;;  %v2877_v47 = vor.u32 %v3482_v45, %v2876_v42  ;;  %v3258_v45 = vld [vmem:[%s5295_s12 + $0x2d8] sm:$0xf] }
  0xe5   :  { %1176 = vmatpush.bf16.msrb.mxu0 %v3470_v36 }
  0xe6   :  { %1247 = vmatpush.bf16.msrb.mxu2 %v2877_v47 }
  0xe8   :  { %v815_v49 = vpop.f32.mrf.mxu3  ;;  %v791_v50 = vpop.f32.mrf.mxu0 }
  0xe9   :  { %v816_v54 = vadd.f32 %v815_v49, %v803_v52  ;;  %1177 = vmatpush.bf16.msrb.mxu0 %v3469_v38  ;;  %v1020_v50 = vperm.slane %v1017_v39, 1  ;;  %v3092_v38 = vld [vmem:[%s5295_s12 + $0x1a4] sm:$0xf0]  ;;  %v3287_v39 = vor.u32 %v3586_v35, %v3286_v32  ;;  %v3551_v32 = vld [vmem:[%s5295_s12 + $0x210] sm:$0xf0] }
  0xea   :  { %v3148_v35 = vld [vmem:[%s5295_s12 + $0x214] sm:$0xf0] }
  0xeb   :  { %v828_v53 = vpop.f32.mrf.mxu2  ;;  %v804_v55 = vpop.f32.mrf.mxu1 }
  0xec   :  { %v829_v56 = vadd.f32 %v828_v53, %v816_v54 }
  0xf0   :  { %v817_v57 = vpop.f32.mrf.mxu3  ;;  %v841_v59 = vpop.f32.mrf.mxu0 }
  0xf1   :  { %v842_v60 = vadd.f32 %v841_v59, %v829_v56  ;;  %v1098_v59 = vld [vmem:[%s5284_s1] sm:$0xff] }
  0xf3   :  { %v830_v61 = vpop.f32.mrf.mxu2  ;;  %v846_v62 = vmax.f32 %v842_v60, 0.0 }
  0xf5   :  { %v848_v63 = vpack.c.bf16 %v846_v62, %v846_v62 }
  0xf7   :  { %1002 = vmatmul.bf16.vlgmr.msrb.gmra.mxu3 %v848_v63 }
  0xf8   :  { %v843_v0 = vpop.f32.mrf.mxu0 }
  0xf9   :  { %v2868_v0 = vld [vmem:[%s5293_s10 + $0x10] sm:$0xf] }
  0xfa   :  { %v2869_v51 = vor.u32 %v3480_v1, %v2868_v0  ;;  %v2950_v0 = vld [vmem:[%s5295_s12 + $0x70] sm:$0xf]  ;;  %v3502_v1 = vld [vmem:[%s5295_s12 + $0x88] sm:$0xf0] }
  0xfc   :  { %1248 = vmatpush.bf16.msrb.mxu2 %v2869_v51  ;;  %v3232_v51 = vld [vmem:[%s5295_s12 + $0x2bc] sm:$0xf0] }
 0x100   :  { %1249 = vmatpush.bf16.msrb.mxu2 %v2861_v30  ;;  %v3520_v30 = vld [vmem:[%s5295_s12 + $0x11c] sm:$0xf] }
 0x101   :  { %v3039_v11 = vor.u32 %v3520_v30, %v3036_v4  ;;  %v3584_v30 = vld [vmem:[%s5295_s12 + $0x31c] sm:$0xf] }
 0x149   :  { %v990_v8 = vpop.f32.mrf.mxu1 }
 0x14a   :  { %v991_v25 = vadd.f32 %v3598_v24, %v990_v8  ;;  %v2870_v8 = vld [vmem:[%s5293_s10 + $0x18] sm:$0xf0]  ;;  %v3035_v24 = vor.u32 %v3523_v20, %v3034_v19  ;;  %v3555_v19 = vld [vmem:[%s5295_s12 + $0x234] sm:$0xf]  ;;  %v3176_v20 = vld [vmem:[%s5295_s12 + $0x24c] sm:$0xf0] }
 0x14c   :  { %1994 = vmatpush.bf16.msra.mxu3 %v3035_v24  ;;  %v3506_v24 = vld [vmem:[%s5295_s12 + $0xac] sm:$0xf] }
 0x151   :  { %v992_v9 = vpop.f32.mrf.mxu1 }
 0x152   :  { %v2873_v9 = vor.u32 %v3479_v7, %v2870_v8  ;;  %v3562_v7 = vld [vmem:[%s5295_s12 + $0x26c] sm:$0xf]  ;;  %v3204_v8 = vld [vmem:[%s5295_s12 + $0x284] sm:$0xf0] }
 0x153   :  { %v3207_v15 = vor.u32 %v3562_v7, %v3204_v8  ;;  %v3535_v8 = vld [vmem:[%s5295_s12 + $0x194] sm:$0xf] }
 0x17a   :  { %v1003_v26 = vpop.f32.mrf.mxu3 }
 0x17b   :  { %v1004_v27 = vadd.f32 %v1003_v26, %v991_v25  ;;  %v3315_v25 = vor.u32 %v3593_v23, %v3314_v22  ;;  %v3590_v26 = vld [vmem:[%s5295_s12 + $0x34c] sm:$0xf]  ;;  %v3488_v22 = vld [vmem:[%s5295_s12 + $0x18] sm:$0xf0] }
 0x17d   :  { %v1007_v28 = vmax.f32 %v1004_v27, 0.0  ;;  %v3316_v27 = vld [vmem:[%s5295_s12 + $0x364] sm:$0xf0]  ;;  %2005 = vmatpush.bf16.msra.mxu1 %v3315_v25  ;;  %v3098_v25 = vld [vmem:[%s5295_s12 + $0x190] sm:$0xf] }
 0x17f   :  { %v1008_v29 = vpack.c.bf16 %v1007_v28, %v1007_v28  ;;  %v3006_v28 = vld [vmem:[%s5295_s12 + $0xe0] sm:$0xf] }
 0x181   :  { %2824 = vmatmul.msk.bf16.vlgmr.msra.gmra.mxu0 %vm1063_vm1, %v1008_v29  ;;  %2825 = vmatmul.msk.bf16.vlgmr.msra.gmra.mxu2 %vm1063_vm1, %v1008_v29  ;;  %v3516_v29 = vld [vmem:[%s5295_s12 + $0xf8] sm:$0xf0] }
 0x182   :  { %v1005_v31 = vpop.f32.mrf.mxu3  ;;  %1259 = vmatpush.bf16.msra.mxu2 %v2889_v2  ;;  %v3007_v42 = vor.u32 %v3516_v29, %v3006_v28  ;;  %2006 = vmatpush.bf16.msra.mxu1 %v3287_v39  ;;  %v2980_v28 = vld [vmem:[%s5295_s12 + $0xc4] sm:$0xf0]  ;;  %v3179_v29 = vor.u32 %v3555_v19, %v3176_v20  ;;  %v2958_v19 = vld [vmem:[%s5295_s12 + $0x78] sm:$0xf]  ;;  %v3503_v20 = vld [vmem:[%s5295_s12 + $0x90] sm:$0xf0] }
 0x183   :  { %v3319_v31 = vor.u32 %v3590_v26, %v3316_v27  ;;  %v3538_v26 = vld [vmem:[%s5295_s12 + $0x1a8] sm:$0xf0]  ;;  %v3175_v27 = vor.u32 %v3558_v17, %v3174_v16  ;;  %v2983_v39 = vor.u32 %v3506_v24, %v2980_v28  ;;  %v3528_v16 = vld [vmem:[%s5295_s12 + $0x15c] sm:$0xf]  ;;  %v3072_v17 = vld [vmem:[%s5295_s12 + $0x174] sm:$0xf0]  ;;  %v2959_v24 = vor.u32 %v3503_v20, %v2958_v19 }
 0x184   :  { %1995 = vmatpush.bf16.msra.mxu3 %v3007_v42  ;;  %v3531_v42 = vld [vmem:[%s5295_s12 + $0x170] sm:$0xf0]  ;;  %v1193_v19 = vld [vmem:[%s5294_s11] sm:$0x3] }
 0x185   :  { %2031 = vmatpush.bf16.msra.mxu0 %v3319_v31  ;;  %v3146_v31 = vld [vmem:[%s5295_s12 + $0x1f8] sm:$0xf]  ;;  %v1195_v20 = vperm.slane %v1193_v19, 0 }
 0x186   :  { %1260 = vmatpush.bf16.msra.mxu2 %v2881_v6  ;;  %v2951_v6 = vor.u32 %v3502_v1, %v2950_v0 }
 0x189   :  { %2032 = vmatpush.bf16.msra.mxu0 %v3291_v44  ;;  %v3147_v44 = vor.u32 %v3551_v32, %v3146_v31  ;;  %v2988_v31 = vld [vmem:[%s5295_s12 + $0xcc] sm:$0xf0] }
 0x18a   :  { %1261 = vmatpush.bf16.msra.mxu2 %v2873_v9  ;;  %v2922_v9 = vld [vmem:[%s5295_s12 + $0x38] sm:$0xf] }
 0x18b   :  { %v2923_v18 = vor.u32 %v3495_v10, %v2922_v9  ;;  %v3100_v9 = vld [vmem:[%s5295_s12 + $0x1ac] sm:$0xf0] }
 0x18e   :  { %1262 = vmatpush.bf16.msra.mxu2 %v2865_v12  ;;  %v3513_v12 = vld [vmem:[%s5295_s12 + $0xe4] sm:$0xf] }
 0x18f   :  { %v3011_v23 = vor.u32 %v3513_v12, %v3008_v14  ;;  %v3510_v14 = vld [vmem:[%s5295_s12 + $0xc8] sm:$0xf0] }
 0x1fe   :  { %v1076_v48 = vpop.f32.mrf.mxu0 }
 0x1ff   :  { %v1077_v49 = vadd.f32 %v1076_v48, %v1019_v46  ;;  %v3579_v46 = vld [vmem:[%s5295_s12 + $0x2f0] sm:$0xf0]  ;;  %v2978_v48 = vld [vmem:[%s5295_s12 + $0xa8] sm:$0xf] }
 0x201   :  { %1093 = vst [vmem:[%s5298_s15] sm:$0xff] %v1077_v49 }
 0x204   :  { %v1089_v52 = vpop.f32.mrf.mxu2 }
 0x205   :  { %v1090_v53 = vadd.f32 %v1089_v52, %v1020_v50  ;;  %v3095_v50 = vor.u32 %v3534_v34, %v3092_v38  ;;  %v3527_v52 = vld [vmem:[%s5295_s12 + $0x154] sm:$0xf]  ;;  %v3548_v34 = vld [vmem:[%s5295_s12 + $0x1fc] sm:$0xf]  ;;  %v3099_v38 = vor.u32 %v3538_v26, %v3098_v25  ;;  %v3514_v26 = vld [vmem:[%s5295_s12 + $0xec] sm:$0xf] }
 0x206   :  { %v1078_v54 = vpop.f32.mrf.mxu0 }
 0x207   :  { %1094 = vst [vmem:[%s5298_s15 + $0x8] sm:$0xff] %v1090_v53  ;;  %v1095_v55 = vmul.f32 0.5, %v1090_v53  ;;  %v3259_v53 = vor.u32 %v3579_v46, %v3258_v45  ;;  %v3576_v54 = vld [vmem:[%s5295_s12 + $0x2dc] sm:$0xf]  ;;  %v3151_v45 = vor.u32 %v3548_v34, %v3148_v35  ;;  %v3118_v46 = vld [vmem:[%s5295_s12 + $0x1c0] sm:$0xf] }
 0x208   :  { %v2960_v34 = vld [vmem:[%s5295_s12 + $0x94] sm:$0xf0] }
 0x209   :  { %v1096_v56 = vmul.f32 1.442695, %v1095_v55  ;;  %v3260_v55 = vld [vmem:[%s5295_s12 + $0x2f4] sm:$0xf0]  ;;  %2007 = vmatpush.bf16.msra.mxu1 %v3259_v53  ;;  %v3071_v53 = vor.u32 %v3531_v42, %v3070_v41  ;;  %v3580_v41 = vld [vmem:[%s5295_s12 + $0x2f8] sm:$0xf0] }
 0x20a   :  { %v3493_v42 = vld [vmem:[%s5295_s12 + $0x44] sm:$0xf] }
 0x20b   :  { %3600 = vpow2.f32 %v1096_v56 }
 0x20c   :  { %v1091_v57 = vpop.f32.mrf.mxu2 }
 0x20d   :  { %v3064_v57 = vld [vmem:[%s5295_s12 + $0x16c] sm:$0xf0] }
 0x20e   :  { %v3067_v43 = vor.u32 %v3527_v52, %v3064_v57  ;;  %v3594_v52 = vld [vmem:[%s5295_s12 + $0x368] sm:$0xf0] }
 0x211   :  { %v3601_v60 = vpop.eup %3600 }
 0x212   :  { %v1099_v61 = vmul.f32 %v3601_v60, %v1098_v59  ;;  %v3263_v59 = vor.u32 %v3576_v54, %v3260_v55  ;;  %v3230_v60 = vld [vmem:[%s5295_s12 + $0x2a0] sm:$0xf]  ;;  %v3591_v54 = vld [vmem:[%s5295_s12 + $0x354] sm:$0xf]  ;;  %v3324_v55 = vld [vmem:[%s5295_s12 + $0x36c] sm:$0xf0] }
 0x213   :  { %v3327_v1 = vor.u32 %v3591_v54, %v3324_v55  ;;  %v3573_v55 = vld [vmem:[%s5295_s12 + $0x2c0] sm:$0xf0] }
 0x214   :  { %v1100_v62 = vadd.f32 %v1099_v61, %v1077_v49  ;;  %v3509_v49 = vld [vmem:[%s5295_s12 + $0xc0] sm:$0xf0]  ;;  %v3572_v61 = vld [vmem:[%s5295_s12 + $0x2b8] sm:$0xf0]  ;;  %2033 = vmatpush.bf16.msra.mxu0 %v3263_v59  ;;  %v3042_v59 = vld [vmem:[%s5295_s12 + $0x120] sm:$0xf] }
 0x215   :  { %v3231_v37 = vor.u32 %v3572_v61, %v3230_v60  ;;  %v3492_v61 = vld [vmem:[%s5295_s12 + $0x3c] sm:$0xf] }
 0x216   :  { %v1101_v63 = vpack.c.bf16 %v1100_v62, %v1100_v62  ;;  %v2979_v62 = vor.u32 %v3509_v49, %v2978_v48  ;;  %v3541_v48 = vld [vmem:[%s5295_s12 + $0x1c4] sm:$0xf]  ;;  %v3120_v49 = vld [vmem:[%s5295_s12 + $0x1dc] sm:$0xf0] }
 0x217   :  { %2008 = vmatpush.bf16.msra.mxu1 %v3231_v37  ;;  %v3296_v37 = vld [vmem:[%s5295_s12 + $0x334] sm:$0xf0] }
 0x218   :  { %1178 = vmatmul.bf16.vlgmr.msrb.gmra.mxu0 %v1101_v63  ;;  %v3569_v63 = vld [vmem:[%s5295_s12 + $0x2a4] sm:$0xf]  ;;  %1996 = vmatpush.bf16.msra.mxu3 %v2979_v62  ;;  %v2924_v62 = vld [vmem:[%s5295_s12 + $0x54] sm:$0xf0]  ;;  %v3299_v10 = vor.u32 %v3584_v30, %v3296_v37 }
 0x219   :  { %v3235_v2 = vor.u32 %v3569_v63, %v3232_v51  ;;  %v3123_v63 = vor.u32 %v3541_v48, %v3120_v49  ;;  %v3294_v51 = vld [vmem:[%s5295_s12 + $0x318] sm:$0xf]  ;;  %v2927_v4 = vor.u32 %v3492_v61, %v2924_v62  ;;  %v3268_v48 = vld [vmem:[%s5295_s12 + $0x2fc] sm:$0xf0]  ;;  %v3570_v61 = vld [vmem:[%s5295_s12 + $0x2ac] sm:$0xf] }
 0x21a   :  { %v3240_v62 = vld [vmem:[%s5295_s12 + $0x2c4] sm:$0xf0]  ;;  %v3182_v37 = vld [vmem:[%s5295_s12 + $0x238] sm:$0xf] }
 0x21b   :  { %2034 = vmatpush.bf16.msra.mxu0 %v3235_v2  ;;  %2009 = vmatpush.bf16.msra.mxu1 %v3203_v13  ;;  %v3014_v2 = vld [vmem:[%s5295_s12 + $0xe8] sm:$0xf]  ;;  %v2986_v13 = vld [vmem:[%s5295_s12 + $0xb0] sm:$0xf] }
 0x21c   :  { %1997 = vmatpush.bf16.msra.mxu3 %v2951_v6  ;;  %v2896_v6 = vld [vmem:[%s5295_s12 + $0x1c] sm:$0xf0] }
 0x21d   :  { %v2899_v12 = vor.u32 %v3485_v5, %v2896_v6  ;;  %v3184_v5 = vld [vmem:[%s5295_s12 + $0x254] sm:$0xf0] }
 0x21f   :  { %2035 = vmatpush.bf16.msra.mxu0 %v3207_v15  ;;  %2010 = vmatpush.bf16.msra.mxu1 %v3175_v27  ;;  %v3103_v15 = vor.u32 %v3535_v8, %v3100_v9  ;;  %v3016_v27 = vld [vmem:[%s5295_s12 + $0x104] sm:$0xf0]  ;;  %v3552_v8 = vld [vmem:[%s5295_s12 + $0x218] sm:$0xf0] }
 0x220   :  { %1998 = vmatpush.bf16.msra.mxu3 %v2923_v18  ;;  %v2987_v18 = vor.u32 %v3510_v14, %v2986_v13  ;;  %v3019_v28 = vor.u32 %v3514_v26, %v3016_v27  ;;  %v3126_v13 = vld [vmem:[%s5295_s12 + $0x1c8] sm:$0xf]  ;;  %v3545_v14 = vld [vmem:[%s5295_s12 + $0x1e0] sm:$0xf0]  ;;  %v3108_v26 = vld [vmem:[%s5295_s12 + $0x1b4] sm:$0xf0] }
 0x223   :  { %2036 = vmatpush.bf16.msra.mxu0 %v3179_v29  ;;  %2011 = vmatpush.bf16.msra.mxu1 %v3147_v44  ;;  %v3507_v29 = vld [vmem:[%s5295_s12 + $0xb4] sm:$0xf]  ;;  %v2932_v44 = vld [vmem:[%s5295_s12 + $0x5c] sm:$0xf0] }
 0x224   :  { %v2991_v32 = vor.u32 %v3507_v29, %v2988_v31  ;;  %v3078_v31 = vld [vmem:[%s5295_s12 + $0x160] sm:$0xf] }
 0x227   :  { %2037 = vmatpush.bf16.msra.mxu0 %v3151_v45 }
 0x22b   :  { %2038 = vmatpush.bf16.msra.mxu0 %v3123_v63  ;;  %v3243_v63 = vor.u32 %v3570_v61, %v3240_v62  ;;  %v3595_v61 = vld [vmem:[%s5295_s12 + $0x370] sm:$0xf0]  ;;  %v3508_v62 = vld [vmem:[%s5295_s12 + $0xbc] sm:$0xf] }
 0x22f   :  { %2083 = vmatpush.bf16.msrb.mxu0 %v3327_v1  ;;  %v3566_v1 = vld [vmem:[%s5295_s12 + $0x288] sm:$0xf0] }
 0x233   :  { %2084 = vmatpush.bf16.msrb.mxu0 %v3299_v10  ;;  %v3549_v10 = vld [vmem:[%s5295_s12 + $0x204] sm:$0xf] }
 0x295   :  { %v1179_v33 = vpop.f32.mrf.mxu0 }
 0x296   :  { %v1180_v36 = vadd.f32 %v3599_v21, %v1179_v33  ;;  %v2894_v21 = vld [vmem:[%s5295_s12] sm:$0xf] }
 0x297   :  { %v2895_v33 = vor.u32 %v3488_v22, %v2894_v21  ;;  %v3075_v21 = vor.u32 %v3528_v16, %v3072_v17  ;;  %v3521_v22 = vld [vmem:[%s5295_s12 + $0x124] sm:$0xf]  ;;  %v3542_v16 = vld [vmem:[%s5295_s12 + $0x1cc] sm:$0xf]  ;;  %v3128_v17 = vld [vmem:[%s5295_s12 + $0x1e4] sm:$0xf0] }
 0x298   :  { %v1183_v47 = vmax.f32 %v1180_v36, 0.0  ;;  %v3499_v36 = vld [vmem:[%s5295_s12 + $0x74] sm:$0xf] }
 0x299   :  { %1999 = vmatpush.bf16.msra.mxu3 %v2895_v33  ;;  %v2955_v57 = vor.u32 %v3499_v36, %v2952_v40  ;;  %v3500_v33 = vld [vmem:[%s5295_s12 + $0x7c] sm:$0xf]  ;;  %v2930_v36 = vld [vmem:[%s5295_s12 + $0x40] sm:$0xf] }
 0x29a   :  { %v4642_v56 = vpack.c.bf16 %v1183_v47, %v1183_v47  ;;  %v3544_v47 = vld [vmem:[%s5295_s12 + $0x1d8] sm:$0xf0]  ;;  %v2963_v35 = vor.u32 %v3500_v33, %v2960_v34  ;;  %v3529_v34 = vld [vmem:[%s5295_s12 + $0x164] sm:$0xf] }
 0x29b   :  { %v3119_v60 = vor.u32 %v3544_v47, %v3118_v46  ;;  %v2935_v46 = vor.u32 %v3493_v42, %v2932_v44  ;;  %v3577_v47 = vld [vmem:[%s5295_s12 + $0x2e4] sm:$0xf]  ;;  %v3532_v33 = vld [vmem:[%s5295_s12 + $0x178] sm:$0xf0]  ;;  %v3522_v42 = vld [vmem:[%s5295_s12 + $0x12c] sm:$0xf] }
 0x29c   :  { %2890 = vmatmul.msk.bf16.vlgmr.msrb.gmra.mxu2 %vm1063_vm1, %v4642_v56  ;;  %v3271_v49 = vor.u32 %v3577_v47, %v3268_v48  ;;  %v3052_v44 = vld [vmem:[%s5295_s12 + $0x144] sm:$0xf0]  ;;  %v3022_v48 = vld [vmem:[%s5295_s12 + $0xf0] sm:$0xf] }
 0x29d   :  { %v1181_v3 = vpop.f32.mrf.mxu0  ;;  %2018 = vmatpush.bf16.msrb.mxu2 %v3095_v50  ;;  %v3322_v50 = vld [vmem:[%s5295_s12 + $0x350] sm:$0xf]  ;;  %2044 = vmatpush.bf16.msrb.mxu3 %v3099_v38  ;;  %v3496_v38 = vld [vmem:[%s5295_s12 + $0x58] sm:$0xf0]  ;;  %v3055_v47 = vor.u32 %v3522_v42, %v3052_v44 }
 0x29e   :  { %v3323_v0 = vor.u32 %v3594_v52, %v3322_v50  ;;  %v3587_v3 = vld [vmem:[%s5295_s12 + $0x330] sm:$0xf0]  ;;  %2012 = vmatpush.bf16.msra.mxu1 %v3119_v60  ;;  %v2931_v40 = vor.u32 %v3496_v38, %v2930_v36  ;;  %v2902_v50 = vld [vmem:[%s5295_s12 + $0x8] sm:$0xf]  ;;  %v3489_v52 = vld [vmem:[%s5295_s12 + $0x20] sm:$0xf0]  ;;  %2085 = vmatpush.bf16.msrb.mxu0 %v3271_v49  ;;  %v3079_v38 = vor.u32 %v3532_v33, %v3078_v31 }
 0x29f   :  { %v3295_v7 = vor.u32 %v3587_v3, %v3294_v51  ;;  %v2903_v54 = vor.u32 %v3489_v52, %v2902_v50  ;;  %v3563_v51 = vld [vmem:[%s5295_s12 + $0x274] sm:$0xf]  ;;  %v3518_v49 = vld [vmem:[%s5295_s12 + $0x108] sm:$0xf0]  ;;  %v3024_v52 = vld [vmem:[%s5295_s12 + $0x10c] sm:$0xf0] }
 0x2a0   :  { %v3515_v50 = vld [vmem:[%s5295_s12 + $0xf4] sm:$0xf]  ;;  %v3246_v31 = vld [vmem:[%s5295_s12 + $0x2b0] sm:$0xf]  ;;  %v3574_v33 = vld [vmem:[%s5295_s12 + $0x2c8] sm:$0xf0] }
 0x2a1   :  { %2019 = vmatpush.bf16.msrb.mxu2 %v3067_v43  ;;  %2045 = vmatpush.bf16.msrb.mxu3 %v3071_v53  ;;  %v3238_v53 = vld [vmem:[%s5295_s12 + $0x2a8] sm:$0xf]  ;;  %v3247_v42 = vor.u32 %v3574_v33, %v3246_v31 }
 0x2a2   :  { %2057 = vmatpush.bf16.msrb.mxu1 %v3323_v0  ;;  %v3210_v0 = vld [vmem:[%s5295_s12 + $0x270] sm:$0xf]  ;;  %2086 = vmatpush.bf16.msrb.mxu0 %v3243_v63  ;;  %v2996_v63 = vld [vmem:[%s5295_s12 + $0xd4] sm:$0xf0] }
 0x2a3   :  { %v3211_v3 = vor.u32 %v3566_v1, %v3210_v0  ;;  %v3592_v1 = vld [vmem:[%s5295_s12 + $0x35c] sm:$0xf] }
 0x2a5   :  { %2020 = vmatpush.bf16.msrb.mxu2 %v3039_v11  ;;  %v3015_v11 = vor.u32 %v3517_v58, %v3014_v2  ;;  %v3556_v2 = vld [vmem:[%s5295_s12 + $0x23c] sm:$0xf] }
 0x2a6   :  { %2058 = vmatpush.bf16.msrb.mxu1 %v3295_v7  ;;  %v3187_v6 = vor.u32 %v3556_v2, %v3184_v5  ;;  %v3154_v7 = vld [vmem:[%s5295_s12 + $0x200] sm:$0xf]  ;;  %v2999_v2 = vor.u32 %v3508_v62, %v2996_v63  ;;  %v3058_v62 = vld [vmem:[%s5295_s12 + $0x130] sm:$0xf]  ;;  %v3526_v63 = vld [vmem:[%s5295_s12 + $0x148] sm:$0xf0] }
 0x2a7   :  { %v3155_v9 = vor.u32 %v3552_v8, %v3154_v7  ;;  %v3302_v5 = vld [vmem:[%s5295_s12 + $0x320] sm:$0xf]  ;;  %v3501_v7 = vld [vmem:[%s5295_s12 + $0x84] sm:$0xf] }
 0x2a8   :  { %v2968_v8 = vld [vmem:[%s5295_s12 + $0x9c] sm:$0xf0] }
 0x2a9   :  { %2021 = vmatpush.bf16.msrb.mxu2 %v3011_v23  ;;  %v3044_v23 = vld [vmem:[%s5295_s12 + $0x13c] sm:$0xf0] }
 0x2aa   :  { %v3047_v25 = vor.u32 %v3521_v22, %v3044_v23  ;;  %v3106_v22 = vld [vmem:[%s5295_s12 + $0x198] sm:$0xf] }
 0x2ac   :  { %2891 = vmatmul.msk.bf16.vlgmr.msra.gmra.mxu2 %vm1063_vm1, %v4642_v56  ;;  %v3524_v56 = vld [vmem:[%s5295_s12 + $0x138] sm:$0xf0] }
 0x2ad   :  { %2022 = vmatpush.bf16.msrb.mxu2 %v2983_v39  ;;  %v3043_v43 = vor.u32 %v3524_v56, %v3042_v59  ;;  %v3266_v39 = vld [vmem:[%s5295_s12 + $0x2e0] sm:$0xf]  ;;  %v2904_v59 = vld [vmem:[%s5295_s12 + $0x24] sm:$0xf0]  ;;  %v3239_v56 = vor.u32 %v3573_v55, %v3238_v53  ;;  %v3027_v55 = vor.u32 %v3515_v50, %v3024_v52  ;;  %v3220_v50 = vld [vmem:[%s5295_s12 + $0x294] sm:$0xf0] }
 0x2ae   :  { %v3267_v45 = vor.u32 %v3580_v41, %v3266_v39  ;;  %v3525_v41 = vld [vmem:[%s5295_s12 + $0x140] sm:$0xf0]  ;;  %v3086_v52 = vld [vmem:[%s5295_s12 + $0x168] sm:$0xf] }
 0x2af   :  { %2046 = vmatpush.bf16.msrb.mxu3 %v3043_v43  ;;  %v3212_v43 = vld [vmem:[%s5295_s12 + $0x28c] sm:$0xf0] }
 0x2b0   :  { %2059 = vmatpush.bf16.msrb.mxu1 %v3267_v45  ;;  %v3215_v30 = vor.u32 %v3563_v51, %v3212_v43  ;;  %v3332_v51 = vld [vmem:[%s5295_s12 + $0x374] sm:$0xf0] }
 0x2b1   :  { %2023 = vmatpush.bf16.msrb.mxu2 %v2955_v57  ;;  %v3486_v57 = vld [vmem:[%s5295_s12 + $0xc] sm:$0xf] }
 0x2b2   :  { %v2907_v60 = vor.u32 %v3486_v57, %v2904_v59  ;;  %2087 = vmatpush.bf16.msrb.mxu0 %v3215_v30  ;;  %v2994_v59 = vld [vmem:[%s5295_s12 + $0xb8] sm:$0xf] }
 0x2b3   :  { %2047 = vmatpush.bf16.msrb.mxu3 %v3015_v11  ;;  %v3156_v11 = vld [vmem:[%s5295_s12 + $0x21c] sm:$0xf0] }
 0x2b4   :  { %2060 = vmatpush.bf16.msrb.mxu1 %v3239_v56  ;;  %v3511_v56 = vld [vmem:[%s5295_s12 + $0xd0] sm:$0xf0] }
 0x2b5   :  { %2024 = vmatpush.bf16.msrb.mxu2 %v2927_v4  ;;  %v3559_v4 = vld [vmem:[%s5295_s12 + $0x250] sm:$0xf0]  ;;  %v2995_v43 = vor.u32 %v3511_v56, %v2994_v59  ;;  %v3560_v59 = vld [vmem:[%s5295_s12 + $0x258] sm:$0xf0] }
 0x2b6   :  { %v3183_v58 = vor.u32 %v3559_v4, %v3182_v37  ;;  %2088 = vmatpush.bf16.msrb.mxu0 %v3187_v6  ;;  %v2966_v37 = vld [vmem:[%s5295_s12 + $0x80] sm:$0xf]  ;;  %v3504_v4 = vld [vmem:[%s5295_s12 + $0x98] sm:$0xf0] }
 0x2b7   :  { %2048 = vmatpush.bf16.msrb.mxu3 %v2987_v18  ;;  %v3131_v18 = vor.u32 %v3542_v16, %v3128_v17  ;;  %v3588_v6 = vld [vmem:[%s5295_s12 + $0x338] sm:$0xf0]  ;;  %v2971_v16 = vor.u32 %v3501_v7, %v2968_v8  ;;  %v3134_v7 = vld [vmem:[%s5295_s12 + $0x1d0] sm:$0xf]  ;;  %v3546_v8 = vld [vmem:[%s5295_s12 + $0x1e8] sm:$0xf0] }
 0x2b8   :  { %2061 = vmatpush.bf16.msrb.mxu1 %v3211_v3 }
 0x2b9   :  { %2025 = vmatpush.bf16.msrb.mxu2 %v2899_v12  ;;  %v3159_v12 = vor.u32 %v3549_v10, %v3156_v11  ;;  %v3304_v10 = vld [vmem:[%s5295_s12 + $0x33c] sm:$0xf0] }
 0x2bb   :  { %2049 = vmatpush.bf16.msrb.mxu3 %v2959_v24  ;;  %2089 = vmatpush.bf16.msrb.mxu0 %v3159_v12  ;;  %v3539_v24 = vld [vmem:[%s5295_s12 + $0x1b0] sm:$0xf0]  ;;  %v2967_v12 = vor.u32 %v3504_v4, %v2966_v37  ;;  %v3550_v37 = vld [vmem:[%s5295_s12 + $0x20c] sm:$0xf]  ;;  %v3164_v4 = vld [vmem:[%s5295_s12 + $0x224] sm:$0xf0] }
 0x2bc   :  { %2062 = vmatpush.bf16.msrb.mxu1 %v3183_v58  ;;  %v3335_v58 = vor.u32 %v3592_v1, %v3332_v51  ;;  %v3162_v51 = vld [vmem:[%s5295_s12 + $0x208] sm:$0xf] }
 0x2bd   :  { %2070 = vmatpush.bf16.msra.mxu2 %v3103_v15  ;;  %v3127_v15 = vor.u32 %v3545_v14, %v3126_v13  ;;  %v3303_v13 = vor.u32 %v3588_v6, %v3302_v5  ;;  %v2938_v14 = vld [vmem:[%s5295_s12 + $0x48] sm:$0xf]  ;;  %v3167_v6 = vor.u32 %v3550_v37, %v3164_v4 }
 0x2bf   :  { %2050 = vmatpush.bf16.msrb.mxu3 %v2931_v40  ;;  %2090 = vmatpush.bf16.msrb.mxu0 %v3131_v18  ;;  %v3050_v40 = vld [vmem:[%s5295_s12 + $0x128] sm:$0xf] }
 0x2c0   :  { %2063 = vmatpush.bf16.msrb.mxu1 %v3155_v9  ;;  %v3051_v45 = vor.u32 %v3525_v41, %v3050_v40  ;;  %v3585_v9 = vld [vmem:[%s5295_s12 + $0x324] sm:$0xf]  ;;  %v3274_v18 = vld [vmem:[%s5295_s12 + $0x2e8] sm:$0xf]  ;;  %v3540_v40 = vld [vmem:[%s5295_s12 + $0x1b8] sm:$0xf0] }
 0x2c1   :  { %2071 = vmatpush.bf16.msra.mxu2 %v3075_v21  ;;  %v3307_v17 = vor.u32 %v3585_v9, %v3304_v10  ;;  %v3543_v9 = vld [vmem:[%s5295_s12 + $0x1d4] sm:$0xf] }
 0x2c3   :  { %2051 = vmatpush.bf16.msrb.mxu3 %v2903_v54  ;;  %v3023_v54 = vor.u32 %v3518_v49, %v3022_v48  ;;  %v3564_v49 = vld [vmem:[%s5295_s12 + $0x27c] sm:$0xf] }
 0x2c4   :  { %2064 = vmatpush.bf16.msrb.mxu1 %v3127_v15  ;;  %v3497_v15 = vld [vmem:[%s5295_s12 + $0x60] sm:$0xf0] }
 0x2c5   :  { %2072 = vmatpush.bf16.msra.mxu2 %v3047_v25  ;;  %v3536_v25 = vld [vmem:[%s5295_s12 + $0x19c] sm:$0xf] }
 0x2c6   :  { %v3111_v29 = vor.u32 %v3536_v25, %v3108_v26  ;;  %v2910_v26 = vld [vmem:[%s5295_s12 + $0x10] sm:$0xf] }
 0x2c9   :  { %2073 = vmatpush.bf16.msra.mxu2 %v3019_v28  ;;  %v3107_v28 = vor.u32 %v3539_v24, %v3106_v22  ;;  %v3578_v22 = vld [vmem:[%s5295_s12 + $0x2ec] sm:$0xf]  ;;  %v2939_v24 = vor.u32 %v3497_v15, %v2938_v14  ;;  %v3002_v14 = vld [vmem:[%s5295_s12 + $0xc0] sm:$0xf]  ;;  %v3512_v15 = vld [vmem:[%s5295_s12 + $0xd8] sm:$0xf0] }
 0x2cd   :  { %2074 = vmatpush.bf16.msra.mxu2 %v2991_v32 }
 0x2d1   :  { %2075 = vmatpush.bf16.msra.mxu2 %v2963_v35  ;;  %v3080_v35 = vld [vmem:[%s5295_s12 + $0x17c] sm:$0xf0] }
 0x2d2   :  { %v3083_v39 = vor.u32 %v3529_v34, %v3080_v35  ;;  %v3487_v34 = vld [vmem:[%s5295_s12 + $0x14] sm:$0xf]  ;;  %v2912_v35 = vld [vmem:[%s5295_s12 + $0x2c] sm:$0xf0] }
 0x2d3   :  { %v2915_v44 = vor.u32 %v3487_v34, %v2912_v35  ;;  %v3254_v34 = vld [vmem:[%s5295_s12 + $0x2b8] sm:$0xf]  ;;  %v3575_v35 = vld [vmem:[%s5295_s12 + $0x2d0] sm:$0xf0] }
 0x2d5   :  { %2076 = vmatpush.bf16.msra.mxu2 %v2935_v46  ;;  %v1196_v46 = vperm.slane %v1193_v19, 1  ;;  %v3581_v19 = vld [vmem:[%s5295_s12 + $0x300] sm:$0xf0] }
 0x2d6   :  { %v3275_v25 = vor.u32 %v3581_v19, %v3274_v18  ;;  %v3003_v19 = vor.u32 %v3512_v15, %v3002_v14 }
 0x2d9   :  { %2077 = vmatpush.bf16.msra.mxu2 %v2907_v60  ;;  %v3330_v60 = vld [vmem:[%s5295_s12 + $0x358] sm:$0xf] }
 0x2da   :  { %v3331_v30 = vor.u32 %v3595_v61, %v3330_v60  ;;  %v3557_v60 = vld [vmem:[%s5295_s12 + $0x244] sm:$0xf]  ;;  %v3192_v61 = vld [vmem:[%s5295_s12 + $0x25c] sm:$0xf0] }
 0x2db   :  { %v3195_v1 = vor.u32 %v3557_v60, %v3192_v61 }
 0x31f   :  { %v1251_v21 = vpop.f32.mrf.mxu2 }
 0x320   :  { %v1252_v23 = vadd.f32 %v1251_v21, %v1195_v20  ;;  %v3494_v20 = vld [vmem:[%s5295_s12 + $0x4c] sm:$0xf]  ;;  %v2940_v21 = vld [vmem:[%s5295_s12 + $0x64] sm:$0xf0] }
 0x322   :  { %v1268_v27 = vmax.f32 %v1252_v23, 0.0  ;;  %v3276_v23 = vld [vmem:[%s5295_s12 + $0x304] sm:$0xf0] }
 0x324   :  { %v4975_v32 = vpack.c.bf16 %v1268_v27, %v1268_v27  ;;  %v3490_v27 = vld [vmem:[%s5295_s12 + $0x28] sm:$0xf0] }
 0x325   :  { %v2911_v41 = vor.u32 %v3490_v27, %v2910_v26  ;;  %v3282_v26 = vld [vmem:[%s5295_s12 + $0x2f0] sm:$0xf]  ;;  %v3582_v27 = vld [vmem:[%s5295_s12 + $0x308] sm:$0xf0] }
 0x326   :  { %2000 = vmatmul.bf16.vlgmr.msra.gmra.mxu3 %v4975_v32  ;;  %2026 = vmatmul.bf16.vlgmr.msrb.gmra.mxu2 %v4975_v32  ;;  %v3283_v31 = vor.u32 %v3582_v27, %v3282_v26 }
 0x327   :  { %2096 = vmatpush.bf16.msra.mxu3 %v3107_v28  ;;  %v1253_v36 = vpop.f32.mrf.mxu2  ;;  %2122 = vmatpush.bf16.msrb.mxu2 %v3111_v29  ;;  %v2943_v28 = vor.u32 %v3494_v20, %v2940_v21  ;;  %v3279_v29 = vor.u32 %v3578_v22, %v3276_v23  ;;  %v3310_v20 = vld [vmem:[%s5295_s12 + $0x328] sm:$0xf]  ;;  %v3589_v21 = vld [vmem:[%s5295_s12 + $0x340] sm:$0xf0] }
 0x328   :  { %v3571_v36 = vld [vmem:[%s5295_s12 + $0x2b4] sm:$0xf]  ;;  %v2974_v22 = vld [vmem:[%s5295_s12 + $0x88] sm:$0xf]  ;;  %v3505_v23 = vld [vmem:[%s5295_s12 + $0xa0] sm:$0xf0] }
 0x32b   :  { %2097 = vmatpush.bf16.msra.mxu3 %v3079_v38  ;;  %2123 = vmatpush.bf16.msrb.mxu2 %v3083_v39  ;;  %v3248_v38 = vld [vmem:[%s5295_s12 + $0x2cc] sm:$0xf0]  ;;  %v3114_v39 = vld [vmem:[%s5295_s12 + $0x1a0] sm:$0xf] }
 0x32c   :  { %v3115_v48 = vor.u32 %v3540_v40, %v3114_v39  ;;  %v3255_v39 = vor.u32 %v3575_v35, %v3254_v34 }
 0x32f   :  { %2098 = vmatpush.bf16.msra.mxu3 %v3051_v45  ;;  %v1264_v53 = vpop.f32.mrf.mxu2  ;;  %2124 = vmatpush.bf16.msrb.mxu2 %v3055_v47  ;;  %v3251_v45 = vor.u32 %v3571_v36, %v3248_v38  ;;  %v3567_v47 = vld [vmem:[%s5295_s12 + $0x290] sm:$0xf0]  ;;  %v2918_v36 = vld [vmem:[%s5295_s12 + $0x18] sm:$0xf] }
 0x330   :  { %v1265_v57 = vadd.f32 %v1264_v53, %v1196_v46  ;;  %v3218_v46 = vld [vmem:[%s5295_s12 + $0x278] sm:$0xf]  ;;  %v3533_v53 = vld [vmem:[%s5295_s12 + $0x180] sm:$0xf0]  ;;  %v3491_v38 = vld [vmem:[%s5295_s12 + $0x30] sm:$0xf0] }
 0x331   :  { %v3087_v56 = vor.u32 %v3533_v53, %v3086_v52  ;;  %v2919_v40 = vor.u32 %v3491_v38, %v2918_v36  ;;  %v3142_v52 = vld [vmem:[%s5295_s12 + $0x1d8] sm:$0xf] }
 0x332   :  { %v1269_v0 = vmax.f32 %v1265_v57, 0.0  ;;  %v3190_v57 = vld [vmem:[%s5295_s12 + $0x240] sm:$0xf] }
 0x333   :  { %2099 = vmatpush.bf16.msra.mxu3 %v3023_v54  ;;  %2125 = vmatpush.bf16.msrb.mxu2 %v3027_v55  ;;  %v3219_v54 = vor.u32 %v3567_v47, %v3218_v46  ;;  %v3223_v55 = vor.u32 %v3564_v49, %v3220_v50  ;;  %v3561_v46 = vld [vmem:[%s5295_s12 + $0x260] sm:$0xf0]  ;;  %v3554_v49 = vld [vmem:[%s5295_s12 + $0x228] sm:$0xf0] }
 0x334   :  { %v5036_v3 = vpack.c.bf16 %v1269_v0, %v1269_v0  ;;  %v3191_v0 = vor.u32 %v3560_v59, %v3190_v57  ;;  %v5269_v57 = vld [vmem:[%s5296_s13] sm:$0x7f] }
 0x335   :  { %v1402_v59 = vperm.slane %v5269_v57, 0 }
 0x336   :  { %2013 = vmatmul.bf16.vlgmr.msra.gmra.mxu1 %v5036_v3  ;;  %2039 = vmatmul.bf16.vlgmr.msra.gmra.mxu0 %v5036_v3 }
 0x337   :  { %2052 = vmatmul.bf16.vlgmr.msrb.gmra.mxu3 %v4975_v32  ;;  %2078 = vmatmul.bf16.vlgmr.msra.gmra.mxu2 %v4975_v32  ;;  %v1266_v11 = vpop.f32.mrf.mxu2 }
 0x338   :  { %2100 = vmatpush.bf16.msra.mxu3 %v2995_v43  ;;  %2109 = vmatpush.bf16.msra.mxu1 %v3331_v30  ;;  %v3553_v43 = vld [vmem:[%s5295_s12 + $0x220] sm:$0xf0]  ;;  %v3059_v30 = vor.u32 %v3526_v63, %v3058_v62  ;;  %v3136_v11 = vld [vmem:[%s5295_s12 + $0x1ec] sm:$0xf0] }
 0x339   :  { %2126 = vmatpush.bf16.msrb.mxu2 %v2999_v2  ;;  %2135 = vmatpush.bf16.msra.mxu0 %v3335_v58  ;;  %v3030_v2 = vld [vmem:[%s5295_s12 + $0xf8] sm:$0xf]  ;;  %v3519_v58 = vld [vmem:[%s5295_s12 + $0x110] sm:$0xf0]  ;;  %v3163_v5 = vor.u32 %v3553_v43, %v3162_v51 }
 0x33a   :  { %v3031_v10 = vor.u32 %v3519_v58, %v3030_v2 }
 0x33c   :  { %2101 = vmatpush.bf16.msra.mxu3 %v2967_v12  ;;  %2110 = vmatpush.bf16.msra.mxu1 %v3303_v13  ;;  %v3338_v12 = vld [vmem:[%s5295_s12 + $0x360] sm:$0xf]  ;;  %v3596_v13 = vld [vmem:[%s5295_s12 + $0x378] sm:$0xf0] }
 0x33d   :  { %2127 = vmatpush.bf16.msrb.mxu2 %v2971_v16  ;;  %2136 = vmatpush.bf16.msra.mxu0 %v3307_v17  ;;  %v3135_v16 = vor.u32 %v3546_v8, %v3134_v7  ;;  %v3139_v17 = vor.u32 %v3543_v9, %v3136_v11  ;;  %v3339_v18 = vor.u32 %v3596_v13, %v3338_v12  ;;  %v1405_v9 = vperm.slane %v5269_v57, 3 }
 0x340   :  { %2102 = vmatpush.bf16.msra.mxu3 %v2939_v24  ;;  %2111 = vmatpush.bf16.msra.mxu1 %v3275_v25  ;;  %v3311_v24 = vor.u32 %v3589_v21, %v3310_v20  ;;  %v2975_v25 = vor.u32 %v3505_v23, %v2974_v22 }
 0x341   :  { %2128 = vmatpush.bf16.msrb.mxu2 %v2943_v28  ;;  %2137 = vmatpush.bf16.msra.mxu0 %v3279_v29  ;;  %v2946_v28 = vld [vmem:[%s5295_s12 + $0x50] sm:$0xf]  ;;  %v3498_v29 = vld [vmem:[%s5295_s12 + $0x68] sm:$0xf0] }
 0x342   :  { %v2947_v33 = vor.u32 %v3498_v29, %v2946_v28 }
 0x344   :  { %2103 = vmatpush.bf16.msra.mxu3 %v2911_v41  ;;  %2112 = vmatpush.bf16.msra.mxu1 %v3247_v42  ;;  %v3226_v41 = vld [vmem:[%s5295_s12 + $0x280] sm:$0xf]  ;;  %v3568_v42 = vld [vmem:[%s5295_s12 + $0x298] sm:$0xf0] }
 0x345   :  { %2129 = vmatpush.bf16.msrb.mxu2 %v2915_v44  ;;  %2138 = vmatpush.bf16.msra.mxu0 %v3251_v45  ;;  %v3227_v44 = vor.u32 %v3568_v42, %v3226_v41  ;;  %v3198_v45 = vld [vmem:[%s5295_s12 + $0x248] sm:$0xf]  ;;  %v1406_v42 = vperm.slane %v5269_v57, 4 }
 0x346   :  { %2065 = vmatmul.bf16.vlgmr.msrb.gmra.mxu1 %v5036_v3  ;;  %2091 = vmatmul.bf16.vlgmr.msrb.gmra.mxu0 %v5036_v3  ;;  %v3199_v47 = vor.u32 %v3561_v46, %v3198_v45 }
 0x347   :  { %2104 = vmatmul.bf16.vlgmr.msra.gmra.mxu3 %v4975_v32 }
 0x348   :  { %2148 = vmatpush.bf16.msrb.mxu3 %v3115_v48  ;;  %2113 = vmatpush.bf16.msra.mxu1 %v3219_v54  ;;  %v3170_v48 = vld [vmem:[%s5295_s12 + $0x210] sm:$0xf] }
 0x349   :  { %2130 = vmatmul.bf16.vlgmr.msrb.gmra.mxu2 %v4975_v32  ;;  %2139 = vmatpush.bf16.msra.mxu0 %v3223_v55  ;;  %v3171_v50 = vor.u32 %v3554_v49, %v3170_v48 }
 0x34c   :  { %2149 = vmatpush.bf16.msrb.mxu3 %v3087_v56  ;;  %2114 = vmatpush.bf16.msra.mxu1 %v3191_v0  ;;  %v1403_v56 = vperm.slane %v5269_v57, 1 }
 0x34d   :  { %2140 = vmatpush.bf16.msra.mxu0 %v3195_v1 }
 0x350   :  { %2150 = vmatpush.bf16.msrb.mxu3 %v3059_v30  ;;  %2115 = vmatpush.bf16.msra.mxu1 %v3163_v5 }
 0x351   :  { %2141 = vmatpush.bf16.msra.mxu0 %v3167_v6  ;;  %v1404_v6 = vperm.slane %v5269_v57, 2 }
 0x354   :  { %2151 = vmatpush.bf16.msrb.mxu3 %v3031_v10  ;;  %2116 = vmatpush.bf16.msra.mxu1 %v3135_v16 }
 0x355   :  { %2142 = vmatpush.bf16.msra.mxu0 %v3139_v17 }
 0x357   :  { %2117 = vmatmul.bf16.vlgmr.msra.gmra.mxu1 %v5036_v3 }
 0x358   :  { %2161 = vmatpush.bf16.msrb.mxu1 %v3339_v18  ;;  %2152 = vmatpush.bf16.msrb.mxu3 %v3003_v19 }
 0x359   :  { %2143 = vmatmul.bf16.vlgmr.msra.gmra.mxu0 %v5036_v3 }
 0x35c   :  { %2162 = vmatpush.bf16.msrb.mxu1 %v3311_v24  ;;  %2153 = vmatpush.bf16.msrb.mxu3 %v2975_v25 }
 0x360   :  { %2163 = vmatpush.bf16.msrb.mxu1 %v3283_v31  ;;  %2154 = vmatpush.bf16.msrb.mxu3 %v2947_v33 }
 0x364   :  { %2164 = vmatpush.bf16.msrb.mxu1 %v3255_v39  ;;  %2155 = vmatpush.bf16.msrb.mxu3 %v2919_v40 }
 0x367   :  { %2156 = vmatmul.bf16.vlgmr.msrb.gmra.mxu3 %v4975_v32  ;;  %v3547_v32 = vld [vmem:[%s5295_s12 + $0x1f0] sm:$0xf0]  ;;  %s3656_s12 = smov [#allocation2]  }
 0x368   :  { %2165 = vmatpush.bf16.msrb.mxu1 %v3227_v44  ;;  %v3143_v53 = vor.u32 %v3547_v32, %v3142_v52  ;;  %v1407_v44 = vperm.slane %v5269_v57, 5  ;;  %s2319_s13 = sshll.u32 %s3656_s12, 4  ;;  %s2320_s13 = int_to_ptr.vmem [resolvable:$true] %s2319_s13 }
 0x36c   :  { %2166 = vmatpush.bf16.msrb.mxu1 %v3199_v47 }
 0x370   :  { %2167 = vmatpush.bf16.msrb.mxu1 %v3171_v50 }
 0x374   :  { %2168 = vmatpush.bf16.msrb.mxu1 %v3143_v53 }
 0x377   :  { %2169 = vmatmul.bf16.vlgmr.msrb.gmra.mxu1 %v5036_v3 }
 0x3a9   :  { %v2001_v54 = vpop.f32.mrf.mxu3  ;;  %v2027_v55 = vpop.f32.mrf.mxu2 }
 0x3aa   :  { %v2002_v62 = vadd.f32 %v2001_v54, %v1402_v59  ;;  %v2028_v63 = vadd.f32 %v2027_v55, %v1403_v56 }
 0x3b1   :  { %v2003_v60 = vpop.f32.mrf.mxu3  ;;  %v2029_v61 = vpop.f32.mrf.mxu2 }
 0x3b3   :  { %v2014_v0 = vpop.f32.mrf.mxu1  ;;  %v2040_v1 = vpop.f32.mrf.mxu0 }
 0x3b4   :  { %v2015_v51 = vadd.f32 %v2014_v0, %v2002_v62  ;;  %v2041_v43 = vadd.f32 %v2040_v1, %v2028_v63 }
 0x3b6   :  { %v3340_v3 = vmul.f32 -1.442695, %v2015_v51  ;;  %v3341_v30 = vmul.f32 -1.442695, %v2041_v43 }
 0x3b8   :  { %3602 = vpow2.f32 %v3340_v3 }
 0x3b9   :  { %3604 = vpow2.f32 %v3341_v30 }
 0x3ba   :  { %v2053_v37 = vpop.f32.mrf.mxu3  ;;  %v2079_v4 = vpop.f32.mrf.mxu2 }
 0x3bb   :  { %v2016_v2 = vpop.f32.mrf.mxu1  ;;  %v2042_v58 = vpop.f32.mrf.mxu0  ;;  %v2054_v11 = vadd.f32 %v2053_v37, %v1404_v6  ;;  %v2080_v14 = vadd.f32 %v2079_v4, %v1405_v9 }
 0x3be   :  { %v3603_v5 = vpop.eup %3602 }
 0x3bf   :  { %v3605_v7 = vpop.eup %3604  ;;  %v2195_v8 = vadd.f32 1.0, %v3603_v5 }
 0x3c0   :  { %v2196_v10 = vadd.f32 1.0, %v3605_v7 }
 0x3c1   :  { %3606 = vrcp.f32 %v2195_v8  ;;  %v2213_v27 = vand.u32 2147483648, %v2195_v8  ;;  %v2211_v34 = vand.u32 2147483647, %v2195_v8  ;;  %vm2207_vm4 = vweird.f32 %v2195_v8 }
 0x3c2   :  { %3608 = vrcp.f32 %v2196_v10  ;;  %v2055_v12 = vpop.f32.mrf.mxu3  ;;  %v2081_v13 = vpop.f32.mrf.mxu2  ;;  %v2228_v35 = vand.u32 2147483648, %v2196_v10  ;;  %v2226_v39 = vand.u32 2147483647, %v2196_v10  ;;  %vm2222_vm6 = vweird.f32 %v2196_v10 }
 0x3c3   :  { %v2066_v15 = vpop.f32.mrf.mxu1  ;;  %v2092_v17 = vpop.f32.mrf.mxu0  ;;  %v2214_v46 = vor.u32 1.1754944e-38, %v2213_v27  ;;  %vm2212_vm7 = vcmp.eq.f32.partialorder %v2211_v34, 8.507059e+37  ;;  %v1408_v34 = vperm.slane %v5269_v57, 6 }
 0x3c4   :  { %v2067_v16 = vadd.f32 %v2066_v15, %v2054_v11  ;;  %v2093_v18 = vadd.f32 %v2092_v17, %v2080_v14  ;;  %v2229_v50 = vor.u32 1.1754944e-38, %v2228_v35  ;;  %vm2227_vm9 = vcmp.eq.f32.partialorder %v2226_v39, 8.507059e+37 }
 0x3c6   :  { %v3342_v19 = vmul.f32 -1.442695, %v2067_v16  ;;  %v3343_v21 = vmul.f32 -1.442695, %v2093_v18 }
 0x3c7   :  { %v3607_v20 = vpop.eup %3606 }
 0x3c8   :  { %v3609_v22 = vpop.eup %3608  ;;  %v2203_v23 = vmul.f32 %v3607_v20, %v2195_v8  ;;  %3610 = vpow2.f32 %v3342_v19  ;;  %vm2208_vm2 = vweird.f32 %v3607_v20 }
 0x3c9   :  { %v2218_v24 = vmul.f32 %v3609_v22, %v2196_v10  ;;  %3612 = vpow2.f32 %v3343_v21  ;;  %vm2223_vm3 = vweird.f32 %v3609_v22  ;;  %vm2209_vm5 = vmor %vm2207_vm4, %vm2208_vm2 }
 0x3ca   :  { %v2204_v25 = vsub.f32 1.0, %v2203_v23  ;;  %v2105_v26 = vpop.f32.mrf.mxu3  ;;  %vm2224_vm8 = vmor %vm2222_vm6, %vm2223_vm3 }
 0x3cb   :  { %v2219_v28 = vsub.f32 1.0, %v2218_v24  ;;  %v2068_v31 = vpop.f32.mrf.mxu1  ;;  %v2094_v36 = vpop.f32.mrf.mxu0  ;;  %v2106_v59 = vadd.f32 %v2105_v26, %v1406_v42 }
 0x3cc   :  { %v2131_v29 = vpop.f32.mrf.mxu2  ;;  %v2205_v33 = vmul.f32 %v3607_v20, %v2204_v25 }
 0x3cd   :  { %v2220_v38 = vmul.f32 %v3609_v22, %v2219_v28  ;;  %v2132_v60 = vadd.f32 %v2131_v29, %v1407_v44 }
 0x3ce   :  { %v3611_v40 = vpop.eup %3610  ;;  %v2206_v41 = vadd.f32 %v3607_v20, %v2205_v33 }
 0x3cf   :  { %v3613_v45 = vpop.eup %3612  ;;  %v2221_v47 = vadd.f32 %v3609_v22, %v2220_v38  ;;  %v2197_v48 = vadd.f32 1.0, %v3611_v40 }
 0x3d0   :  { %v2210_v49 = vsel %vm2209_vm5, %v3607_v20, %v2206_v41  ;;  %v2198_v52 = vadd.f32 1.0, %v3613_v45 }
 0x3d1   :  { %v2215_v32 = vsel %vm2212_vm7, %v2214_v46, %v2210_v49  ;;  %v2225_v53 = vsel %vm2224_vm8, %v3609_v22, %v2221_v47  ;;  %3614 = vrcp.f32 %v2197_v48  ;;  %v2243_v2 = vand.u32 2147483648, %v2197_v48 }
 0x3d2   :  { %2307 = vst [vmem:[#allocation2] sm:$0xff] %v2215_v32  ;;  %v2230_v54 = vsel %vm2227_vm9, %v2229_v50, %v2225_v53  ;;  %3616 = vrcp.f32 %v2198_v52  ;;  %v2107_v55 = vpop.f32.mrf.mxu3  ;;  %v2241_v6 = vand.u32 2147483647, %v2197_v48  ;;  %v2258_v7 = vand.u32 2147483648, %v2198_v52 }
 0x3d3   :  { %2308 = vst [vmem:[#allocation2 + $0x8] sm:$0xff] %v2230_v54  ;;  %v2256_v10 = vand.u32 2147483647, %v2198_v52  ;;  %vm2237_vm12 = vweird.f32 %v2197_v48  ;;  %v2244_v14 = vor.u32 1.1754944e-38, %v2243_v2  ;;  %vm2252_vm14 = vweird.f32 %v2198_v52 }
 0x3d4   :  { %v2133_v56 = vpop.f32.mrf.mxu2  ;;  %v2118_v61 = vpop.f32.mrf.mxu1  ;;  %vm2242_vm15 = vcmp.eq.f32.partialorder %v2241_v6, 8.507059e+37  ;;  %v2259_v18 = vor.u32 1.1754944e-38, %v2258_v7 }
 0x3d5   :  { %v2119_v62 = vadd.f32 %v2118_v61, %v2106_v59  ;;  %vm2257_vm2 = vcmp.eq.f32.partialorder %v2256_v10, 8.507059e+37 }
 0x3d6   :  { %v2144_v63 = vpop.f32.mrf.mxu0 }
 0x3d7   :  { %v2145_v0 = vadd.f32 %v2144_v63, %v2132_v60  ;;  %v3615_v1 = vpop.eup %3614  ;;  %v3344_v51 = vmul.f32 -1.442695, %v2119_v62 }
 0x3d8   :  { %v3617_v43 = vpop.eup %3616  ;;  %v2233_v3 = vmul.f32 %v3615_v1, %v2197_v48  ;;  %vm2238_vm10 = vweird.f32 %v3615_v1 }
 0x3d9   :  { %v3345_v30 = vmul.f32 -1.442695, %v2145_v0  ;;  %v2248_v37 = vmul.f32 %v3617_v43, %v2198_v52  ;;  %3618 = vpow2.f32 %v3344_v51  ;;  %vm2253_vm11 = vweird.f32 %v3617_v43  ;;  %vm2239_vm13 = vmor %vm2237_vm12, %vm2238_vm10 }
 0x3da   :  { %v2234_v4 = vsub.f32 1.0, %v2233_v3  ;;  %vm2254_vm1 = vmor %vm2252_vm14, %vm2253_vm11 }
 0x3db   :  { %3620 = vpow2.f32 %v3345_v30  ;;  %v2249_v58 = vsub.f32 1.0, %v2248_v37 }
 0x3dc   :  { %v2235_v5 = vmul.f32 %v3615_v1, %v2234_v4  ;;  %v2120_v8 = vpop.f32.mrf.mxu1 }
 0x3dd   :  { %v2250_v9 = vmul.f32 %v3617_v43, %v2249_v58 }
 0x3de   :  { %v2146_v11 = vpop.f32.mrf.mxu0  ;;  %v2236_v12 = vadd.f32 %v3615_v1, %v2235_v5 }
 0x3df   :  { %v3619_v13 = vpop.eup %3618  ;;  %v2251_v15 = vadd.f32 %v3617_v43, %v2250_v9 }
 0x3e0   :  { %v2240_v17 = vsel %vm2239_vm13, %v3615_v1, %v2236_v12  ;;  %v2199_v19 = vadd.f32 1.0, %v3619_v13 }
 0x3e1   :  { %v3621_v16 = vpop.eup %3620  ;;  %v2245_v20 = vsel %vm2242_vm15, %v2244_v14, %v2240_v17  ;;  %v2255_v21 = vsel %vm2254_vm1, %v3617_v43, %v2251_v15 }
 0x3e2   :  { %v2200_v22 = vadd.f32 1.0, %v3621_v16  ;;  %2309 = vst [vmem:[#allocation2 + $0x10] sm:$0xff] %v2245_v20  ;;  %v2260_v23 = vsel %vm2257_vm2, %v2259_v18, %v2255_v21  ;;  %3622 = vrcp.f32 %v2199_v19  ;;  %v2273_v31 = vand.u32 2147483648, %v2199_v19 }
 0x3e3   :  { %2310 = vst [vmem:[#allocation2 + $0x18] sm:$0xff] %v2260_v23  ;;  %v2271_v36 = vand.u32 2147483647, %v2199_v19  ;;  %vm2267_vm5 = vweird.f32 %v2199_v19 }
 0x3e4   :  { %3624 = vrcp.f32 %v2200_v22  ;;  %v2288_v38 = vand.u32 2147483648, %v2200_v22  ;;  %v2286_v40 = vand.u32 2147483647, %v2200_v22  ;;  %v2274_v42 = vor.u32 1.1754944e-38, %v2273_v31 }
 0x3e5   :  { %vm2282_vm7 = vweird.f32 %v2200_v22  ;;  %vm2272_vm8 = vcmp.eq.f32.partialorder %v2271_v36, 8.507059e+37 }
 0x3e6   :  { %v2289_v48 = vor.u32 1.1754944e-38, %v2288_v38  ;;  %vm2287_vm10 = vcmp.eq.f32.partialorder %v2286_v40, 8.507059e+37 }
 0x3e8   :  { %v3623_v24 = vpop.eup %3622 }
 0x3e9   :  { %v2263_v27 = vmul.f32 %v3623_v24, %v2199_v19  ;;  %vm2268_vm3 = vweird.f32 %v3623_v24 }
 0x3ea   :  { %v2157_v25 = vpop.f32.mrf.mxu3  ;;  %v3625_v26 = vpop.eup %3624  ;;  %vm2269_vm6 = vmor %vm2267_vm5, %vm2268_vm3 }
 0x3eb   :  { %v2278_v28 = vmul.f32 %v3625_v26, %v2200_v22  ;;  %v2264_v29 = vsub.f32 1.0, %v2263_v27  ;;  %vm2283_vm4 = vweird.f32 %v3625_v26  ;;  %v2158_v45 = vadd.f32 %v2157_v25, %v1408_v34 }
 0x3ec   :  { %vm2284_vm9 = vmor %vm2282_vm7, %vm2283_vm4 }
 0x3ed   :  { %v2279_v33 = vsub.f32 1.0, %v2278_v28  ;;  %v2265_v35 = vmul.f32 %v3623_v24, %v2264_v29 }
 0x3ef   :  { %v2280_v39 = vmul.f32 %v3625_v26, %v2279_v33  ;;  %v2266_v41 = vadd.f32 %v3623_v24, %v2265_v35 }
 0x3f1   :  { %v2281_v44 = vadd.f32 %v3625_v26, %v2280_v39  ;;  %v2270_v47 = vsel %vm2269_vm6, %v3623_v24, %v2266_v41 }
 0x3f2   :  { %v2159_v46 = vpop.f32.mrf.mxu3  ;;  %v2275_v49 = vsel %vm2272_vm8, %v2274_v42, %v2270_v47 }
 0x3f3   :  { %v2285_v50 = vsel %vm2284_vm9, %v3625_v26, %v2281_v44  ;;  %2311 = vst [vmem:[#allocation2 + $0x20] sm:$0xff] %v2275_v49 }
 0x3f4   :  { %v2170_v57 = vpop.f32.mrf.mxu1  ;;  %v2290_v32 = vsel %vm2287_vm10, %v2289_v48, %v2285_v50 }
 0x3f5   :  { %v2171_v52 = vadd.f32 %v2170_v57, %v2158_v45  ;;  %2312 = vst [vmem:[#allocation2 + $0x28] sm:$0xff] %v2290_v32 }
 0x3f7   :  { %v3346_v53 = vmul.f32 -1.442695, %v2171_v52 }
 0x3f9   :  { %3626 = vpow2.f32 %v3346_v53 }
 0x3fc   :  { %v2172_v54 = vpop.f32.mrf.mxu1 }
 0x3ff   :  { %v3627_v55 = vpop.eup %3626 }
 0x400   :  { %v2201_v59 = vadd.f32 1.0, %v3627_v55 }
 0x402   :  { %3628 = vrcp.f32 %v2201_v59  ;;  %v2303_v62 = vand.u32 2147483648, %v2201_v59  ;;  %v2301_v0 = vand.u32 2147483647, %v2201_v59  ;;  %vm2297_vm12 = vweird.f32 %v2201_v59 }
 0x404   :  { %v2304_v51 = vor.u32 1.1754944e-38, %v2303_v62  ;;  %vm2302_vm14 = vcmp.eq.f32.partialorder %v2301_v0, 8.507059e+37 }
 0x408   :  { %v3629_v56 = vpop.eup %3628 }
 0x409   :  { %v2293_v60 = vmul.f32 %v3629_v56, %v2201_v59  ;;  %vm2298_vm11 = vweird.f32 %v3629_v56 }
 0x40a   :  { %vm2299_vm13 = vmor %vm2297_vm12, %vm2298_vm11 }
 0x40b   :  { %v2294_v61 = vsub.f32 1.0, %v2293_v60 }
 0x40d   :  { %v2295_v63 = vmul.f32 %v3629_v56, %v2294_v61 }
 0x40f   :  { %v2296_v1 = vadd.f32 %v3629_v56, %v2295_v63 }
 0x411   :  { %v2300_v43 = vsel %vm2299_vm13, %v3629_v56, %v2296_v1 }
 0x412   :  { %v2305_v3 = vsel %vm2302_vm14, %v2304_v51, %v2300_v43 }
 0x413   :  { %2313 = vst.msk [vmem:[#allocation2 + $0x30] sm:$0xff] %vm659_vm0, %v2305_v3 }
 0x414   :  { %2324 = dma.vmem_to_hbm [thread:$0]  %s2320_s13, 896, %s2322_s23, [#allocation3]  }
 0x415   :  { %3654 = dma.done.wait [#allocation3], 896  }
 0x416   :  { %3655 = vsyncadd [#allocation3], 4294966400 }
 0x417   :  { %2333 = vsyncpa [#allocation3], 1 }

</bundles_post_ra>
